<compile_context>
chip_gen: v6e
topology: v6e:2x2x1
jax: 0.10.0
libtpu: 0.0.40
codegen_flags: <defaults>
</compile_context>

<pallas_src>
import jax
import jax.numpy as jnp
from jax.experimental import pallas as pl
from jax.experimental.pallas import tpu as pltpu

_MEAN = (0.485, 0.456, 0.406)
_STD = (0.229, 0.224, 0.225)


def _pick_nb(n, c, h, w, size, itemsize):
    """Images per grid step, capped by a conservative double-buffered VMEM budget."""
    budget = 24 * 1024 * 1024
    for nb in (8, 4, 2, 1):
        if n % nb == 0:
            blk = 2 * nb * c * (h * w + size * size) * itemsize  # 2x: double buffering
            if blk <= budget:
                return nb
    return 1


def _make_kernel(*, pad, size, nb, c, h, w, dtype):
    S = size
    inv_std = tuple(1.0 / s for s in _STD)
    bias = tuple(-m / s for m, s in zip(_MEAN, _STD))
    # Top margin rounded up to a sublane multiple so the scratch stores are
    # aligned; the crop start is shifted by (tm - pad) to compensate.
    tm = (-(-pad // 8)) * 8 if pad > 0 else 0

    def kernel(y0_ref, x0_ref, img_ref, out_ref, *scratch):
        step = pl.program_id(0)
        for b in range(nb):
            g = step * nb + b
            y0 = y0_ref[g]  # row offset into the padded frame, in [0, 2p+h-S]
            x0 = x0_ref[g]  # col offset into the padded frame

            # Column-selection matrix with replicate clamping:
            #   col_sel[k, j] = 1  iff  k == clip(j + x0 - pad, 0, w-1)
            # so (rows @ col_sel)[i, j] = rows[i, clip(j + x0 - pad, 0, w-1)],
            # i.e. the replicate-padded column crop, with no dynamic lane offsets.
            kk = jax.lax.broadcasted_iota(jnp.int32, (w, S), 0)
            jj = jax.lax.broadcasted_iota(jnp.int32, (w, S), 1)
            src_col = jnp.clip(jj + (x0 - pad), 0, w - 1)
            col_sel = (kk == src_col).astype(dtype)

            for ci in range(c):
                if pad > 0:
                    pad_ref = scratch[0]
                    plane = img_ref[b, ci, :, :]                       # (h, w)
                    # Row-replicated copy (static-offset stores only).
                    pad_ref[ci, 0:tm, :] = jnp.broadcast_to(
                        plane[0:1, :], (tm, w))
                    pad_ref[ci, tm:tm + h, :] = plane
                    pad_ref[ci, tm + h:tm + h + pad, :] = jnp.broadcast_to(
                        plane[h - 1:h, :], (pad, w))
                    rows = pad_ref[ci, pl.ds(y0 + (tm - pad), S), :]   # (S, w)
                else:
                    rows = img_ref[b, ci, pl.ds(y0, S), :]             # (S, w)

                acc = jnp.dot(rows, col_sel,
                              preferred_element_type=jnp.float32)      # (S, S)
                # Normalize fused as a single scale + bias.
                out_ref[b, ci, :, :] = (acc * inv_std[ci]
                                        + bias[ci]).astype(out_ref.dtype)

    return kernel


def medium_aug(x, key, pad=0, size=224):
    """JAX/Pallas equivalent of _MediumAug.forward. x: (B,T,C,H,W) or (N,C,H,W)."""
    extra_dim = x.ndim > 4
    if extra_dim:
        assert x.ndim == 5
        B, T, C, H, W = x.shape
        x = x.reshape((B * T, C, H, W))
    n, c, h, w = x.shape
    assert h == w
    assert c == 3                      # Normalize is 3-channel
    assert 2 * pad + h >= size

    # torch.randint(0, 2*pad + h - size + 1, (n,1,1,2)): [..., 0] is the x
    # (width) shift, [..., 1] the y (height) shift.  The grid_sample positions
    # are exactly (output index + shift) in the padded image, so the integer
    # shift *is* the crop offset.
    shift = jax.random.randint(key, (n, 2), 0, 2 * pad + h - size + 1,
                               dtype=jnp.int32)
    x0 = shift[:, 0]                   # flat 1-D scalars: no SMEM lane padding
    y0 = shift[:, 1]

    nb = _pick_nb(n, c, h, w, size, x.dtype.itemsize)
    grid = (n // nb,)

    tm = (-(-pad // 8)) * 8 if pad > 0 else 0
    scratch_shapes = (
        [pltpu.VMEM((c, tm + h + pad, w), x.dtype)] if pad > 0 else []
    )

    kernel = _make_kernel(pad=pad, size=size, nb=nb, c=c, h=h, w=w,
                          dtype=x.dtype)

    out = pl.pallas_call(
        kernel,
        out_shape=jax.ShapeDtypeStruct((n, c, size, size), x.dtype),
        grid=grid,
        in_specs=[
            pl.BlockSpec(memory_space=pltpu.MemorySpace.SMEM),      # y0
            pl.BlockSpec(memory_space=pltpu.MemorySpace.SMEM),      # x0
            pl.BlockSpec((nb, c, h, w), lambda i: (i, 0, 0, 0)),
        ],
        out_specs=pl.BlockSpec((nb, c, size, size), lambda i: (i, 0, 0, 0)),
        scratch_shapes=scratch_shapes,
        compiler_params=pltpu.CompilerParams(
            dimension_semantics=("parallel",),   # disjoint output blocks
            vmem_limit_bytes=32 * 1024 * 1024,
        ),
    )(y0, x0, x)

    if extra_dim:
        out = out.reshape((B, T, C, size, size))
    return out


def _reference(x, key, pad, size):
    """Pure-JAX reference (replicate pad + integer crop + normalize)."""
    extra_dim = x.ndim > 4
    if extra_dim:
        B, T, C, H, W = x.shape
        x = x.reshape((B * T, C, H, W))
    n, c, h, w = x.shape
    xp = (jnp.pad(x, ((0, 0), (0, 0), (pad, pad), (pad, pad)), mode="edge")
          if pad > 0 else x)
    shift = jax.random.randint(key, (n, 2), 0, 2 * pad + h - size + 1,
                               dtype=jnp.int32)

    def crop_one(img, s):
        return jax.lax.dynamic_slice(img, (0, s[1], s[0]), (c, size, size))

    cropped = jax.vmap(crop_one)(xp, shift)
    mean = jnp.array(_MEAN, jnp.float32).reshape(1, 3, 1, 1)
    std = jnp.array(_STD, jnp.float32).reshape(1, 3, 1, 1)
    out = ((cropped - mean) / std).astype(x.dtype)
    if extra_dim:
        out = out.reshape((B, T, C, size, size))
    return out


if __name__ == "__main__":
    key = jax.random.PRNGKey(0)
    kx, ks = jax.random.split(key)
    B, T, C, H, W = 2, 2, 3, 16, 16
    pad, size = 2, 12
    x = jax.random.uniform(kx, (B, T, C, H, W), dtype=jnp.float32)

    out = jax.block_until_ready(medium_aug(x, ks, pad=pad, size=size))
    assert out.shape == (B, T, C, size, size), out.shape

    ref = _reference(x, ks, pad, size)
    err = float(jnp.max(jnp.abs(out - ref)))
    assert err < 1e-4, f"max abs error {err}"
    print("KERNEL_OK")
</pallas_src>

<mosaic_0001>
module attributes {stable_mosaic.version = 11 : i64} {
  func.func @kernel(%arg0: i32, %arg1: memref<4xi32, #tpu.memory_space<smem>>, %arg2: memref<4xi32, #tpu.memory_space<smem>>, %arg3: memref<4x3x16x16xf32, #tpu.memory_space<vmem>>, %arg4: memref<4x3x12x12xf32, #tpu.memory_space<vmem>>, %arg5: memref<3x26x16xf32, #tpu.memory_space<vmem>>) attributes {dimension_semantics = [#tpu.dimension_semantics<parallel>], iteration_bounds = array<i64: 1>, scalar_prefetch = 0 : i64, scratch_operands = 1 : i64, tpu.core_type = #tpu.core_type<tc>, window_params = [{transform_indices = @transform_0, window_bounds = array<i64: 4>}, {transform_indices = @transform_1, window_bounds = array<i64: 4>}, {transform_indices = @transform_2, window_bounds = array<i64: 4, 3, 16, 16>}, {transform_indices = @transform_3, window_bounds = array<i64: 4, 3, 12, 12>}]} {
    %c4_i32 = arith.constant 4 : i32
    %0 = arith.muli %arg0, %c4_i32 : i32
    %c0_i32 = arith.constant 0 : i32
    %1 = arith.addi %0, %c0_i32 : i32
    %2 = arith.index_cast %1 : i32 to index
    %3 = memref.load %arg1[%2] : memref<4xi32, #tpu.memory_space<smem>>
    %4 = arith.index_cast %1 : i32 to index
    %5 = memref.load %arg2[%4] : memref<4xi32, #tpu.memory_space<smem>>
    %6 = tpu.iota {dimensions = array<i32: 0>} : vector<16x12xi32>
    %7 = tpu.iota {dimensions = array<i32: 1>} : vector<16x12xi32>
    %c2_i32 = arith.constant 2 : i32
    %8 = arith.subi %5, %c2_i32 : i32
    %9 = vector.broadcast %8 : i32 to vector<16x12xi32>
    %10 = arith.addi %7, %9 : vector<16x12xi32>
    %c0_i32_0 = arith.constant 0 : i32
    %c15_i32 = arith.constant 15 : i32
    %11 = vector.broadcast %c0_i32_0 : i32 to vector<16x12xi32>
    %12 = arith.maxsi %11, %10 : vector<16x12xi32>
    %13 = vector.broadcast %c15_i32 : i32 to vector<16x12xi32>
    %14 = arith.minsi %13, %12 : vector<16x12xi32>
    %15 = arith.cmpi eq, %6, %14 : vector<16x12xi32>
    %16 = arith.extui %15 : vector<16x12xi1> to vector<16x12xi32>
    %17 = arith.sitofp %16 : vector<16x12xi32> to vector<16x12xf32>
    %c0 = arith.constant 0 : index
    %c0_1 = arith.constant 0 : index
    %c0_2 = arith.constant 0 : index
    %c0_3 = arith.constant 0 : index
    %18 = vector.load %arg3[%c0, %c0_1, %c0_2, %c0_3] : memref<4x3x16x16xf32, #tpu.memory_space<vmem>>, vector<1x1x16x16xf32>
    %19 = vector.shape_cast %18 : vector<1x1x16x16xf32> to vector<16x16xf32>
    %20 = vector.extract_strided_slice %19 {offsets = [0, 0], sizes = [1, 16], strides = [1, 1]} : vector<16x16xf32> to vector<1x16xf32>
    %21 = vector.shape_cast %20 : vector<1x16xf32> to vector<1x16xf32>
    %22 = vector.broadcast %21 : vector<1x16xf32> to vector<8x16xf32>
    %c0_4 = arith.constant 0 : index
    %c0_5 = arith.constant 0 : index
    %c0_6 = arith.constant 0 : index
    %23 = vector.load %arg5[%c0_4, %c0_5, %c0_6] : memref<3x26x16xf32, #tpu.memory_space<vmem>>, vector<1x8x16xf32>
    %24 = vector.shape_cast %23 : vector<1x8x16xf32> to vector<8x16xf32>
    %25 = vector.shape_cast %22 : vector<8x16xf32> to vector<1x8x16xf32>
    tpu.vector_store %arg5[%c0_4, %c0_5, %c0_6], %25 {strides = array<i32>} : memref<3x26x16xf32, #tpu.memory_space<vmem>>, vector<1x8x16xf32>,
    %c0_7 = arith.constant 0 : index
    %c8 = arith.constant 8 : index
    %c0_8 = arith.constant 0 : index
    %26 = vector.load %arg5[%c0_7, %c8, %c0_8] : memref<3x26x16xf32, #tpu.memory_space<vmem>>, vector<1x16x16xf32>
    %27 = vector.shape_cast %26 : vector<1x16x16xf32> to vector<16x16xf32>
    %28 = vector.shape_cast %19 : vector<16x16xf32> to vector<1x16x16xf32>
    tpu.vector_store %arg5[%c0_7, %c8, %c0_8], %28 {strides = array<i32>} : memref<3x26x16xf32, #tpu.memory_space<vmem>>, vector<1x16x16xf32>,
    %29 = vector.extract_strided_slice %19 {offsets = [15, 0], sizes = [1, 16], strides = [1, 1]} : vector<16x16xf32> to vector<1x16xf32>
    %30 = vector.shape_cast %29 : vector<1x16xf32> to vector<1x16xf32>
    %31 = vector.broadcast %30 : vector<1x16xf32> to vector<2x16xf32>
    %c0_9 = arith.constant 0 : index
    %c24 = arith.constant 24 : index
    %c0_10 = arith.constant 0 : index
    %32 = vector.load %arg5[%c0_9, %c24, %c0_10] : memref<3x26x16xf32, #tpu.memory_space<vmem>>, vector<1x2x16xf32>
    %33 = vector.shape_cast %32 : vector<1x2x16xf32> to vector<2x16xf32>
    %34 = vector.shape_cast %31 : vector<2x16xf32> to vector<1x2x16xf32>
    tpu.vector_store %arg5[%c0_9, %c24, %c0_10], %34 {strides = array<i32>} : memref<3x26x16xf32, #tpu.memory_space<vmem>>, vector<1x2x16xf32>,
    %c6_i32 = arith.constant 6 : i32
    %35 = arith.addi %3, %c6_i32 : i32
    %c0_11 = arith.constant 0 : index
    %36 = arith.index_cast %35 : i32 to index
    %c0_12 = arith.constant 0 : index
    %37 = vector.load %arg5[%c0_11, %36, %c0_12] : memref<3x26x16xf32, #tpu.memory_space<vmem>>, vector<1x12x16xf32>
    %38 = vector.shape_cast %37 : vector<1x12x16xf32> to vector<12x16xf32>
    %cst = arith.constant dense<0.000000e+00> : vector<12x12xf32>
    %39 = tpu.matmul %38, %17, %cst {dimension_numbers = #tpu.dot_dimension_numbers<[1], [0], [0], [1], [0, 0, 1, 1], [], []>} : vector<12x16xf32>, vector<16x12xf32>, vector<12x12xf32> -> vector<12x12xf32>
    %cst_13 = arith.constant 4.36681223 : f32
    %40 = vector.broadcast %cst_13 : f32 to vector<12x12xf32>
    %41 = arith.mulf %39, %40 : vector<12x12xf32>
    %cst_14 = arith.constant -2.11790395 : f32
    %42 = vector.broadcast %cst_14 : f32 to vector<12x12xf32>
    %43 = arith.addf %41, %42 : vector<12x12xf32>
    %c0_15 = arith.constant 0 : index
    %c0_16 = arith.constant 0 : index
    %c0_17 = arith.constant 0 : index
    %c0_18 = arith.constant 0 : index
    %44 = vector.load %arg4[%c0_15, %c0_16, %c0_17, %c0_18] : memref<4x3x12x12xf32, #tpu.memory_space<vmem>>, vector<1x1x12x12xf32>
    %45 = vector.shape_cast %44 : vector<1x1x12x12xf32> to vector<12x12xf32>
    %46 = vector.shape_cast %43 : vector<12x12xf32> to vector<1x1x12x12xf32>
    tpu.vector_store %arg4[%c0_15, %c0_16, %c0_17, %c0_18], %46 {strides = array<i32>} : memref<4x3x12x12xf32, #tpu.memory_space<vmem>>, vector<1x1x12x12xf32>,
    %c0_19 = arith.constant 0 : index
    %c1 = arith.constant 1 : index
    %c0_20 = arith.constant 0 : index
    %c0_21 = arith.constant 0 : index
    %47 = vector.load %arg3[%c0_19, %c1, %c0_20, %c0_21] : memref<4x3x16x16xf32, #tpu.memory_space<vmem>>, vector<1x1x16x16xf32>
    %48 = vector.shape_cast %47 : vector<1x1x16x16xf32> to vector<16x16xf32>
    %49 = vector.extract_strided_slice %48 {offsets = [0, 0], sizes = [1, 16], strides = [1, 1]} : vector<16x16xf32> to vector<1x16xf32>
    %50 = vector.shape_cast %49 : vector<1x16xf32> to vector<1x16xf32>
    %51 = vector.broadcast %50 : vector<1x16xf32> to vector<8x16xf32>
    %c1_22 = arith.constant 1 : index
    %c0_23 = arith.constant 0 : index
    %c0_24 = arith.constant 0 : index
    %52 = vector.load %arg5[%c1_22, %c0_23, %c0_24] : memref<3x26x16xf32, #tpu.memory_space<vmem>>, vector<1x8x16xf32>
    %53 = vector.shape_cast %52 : vector<1x8x16xf32> to vector<8x16xf32>
    %54 = vector.shape_cast %51 : vector<8x16xf32> to vector<1x8x16xf32>
    tpu.vector_store %arg5[%c1_22, %c0_23, %c0_24], %54 {strides = array<i32>} : memref<3x26x16xf32, #tpu.memory_space<vmem>>, vector<1x8x16xf32>,
    %c1_25 = arith.constant 1 : index
    %c8_26 = arith.constant 8 : index
    %c0_27 = arith.constant 0 : index
    %55 = vector.load %arg5[%c1_25, %c8_26, %c0_27] : memref<3x26x16xf32, #tpu.memory_space<vmem>>, vector<1x16x16xf32>
    %56 = vector.shape_cast %55 : vector<1x16x16xf32> to vector<16x16xf32>
    %57 = vector.shape_cast %48 : vector<16x16xf32> to vector<1x16x16xf32>
    tpu.vector_store %arg5[%c1_25, %c8_26, %c0_27], %57 {strides = array<i32>} : memref<3x26x16xf32, #tpu.memory_space<vmem>>, vector<1x16x16xf32>,
    %58 = vector.extract_strided_slice %48 {offsets = [15, 0], sizes = [1, 16], strides = [1, 1]} : vector<16x16xf32> to vector<1x16xf32>
    %59 = vector.shape_cast %58 : vector<1x16xf32> to vector<1x16xf32>
    %60 = vector.broadcast %59 : vector<1x16xf32> to vector<2x16xf32>
    %c1_28 = arith.constant 1 : index
    %c24_29 = arith.constant 24 : index
    %c0_30 = arith.constant 0 : index
    %61 = vector.load %arg5[%c1_28, %c24_29, %c0_30] : memref<3x26x16xf32, #tpu.memory_space<vmem>>, vector<1x2x16xf32>
    %62 = vector.shape_cast %61 : vector<1x2x16xf32> to vector<2x16xf32>
    %63 = vector.shape_cast %60 : vector<2x16xf32> to vector<1x2x16xf32>
    tpu.vector_store %arg5[%c1_28, %c24_29, %c0_30], %63 {strides = array<i32>} : memref<3x26x16xf32, #tpu.memory_space<vmem>>, vector<1x2x16xf32>,
    %c6_i32_31 = arith.constant 6 : i32
    %64 = arith.addi %3, %c6_i32_31 : i32
    %c1_32 = arith.constant 1 : index
    %65 = arith.index_cast %64 : i32 to index
    %c0_33 = arith.constant 0 : index
    %66 = vector.load %arg5[%c1_32, %65, %c0_33] : memref<3x26x16xf32, #tpu.memory_space<vmem>>, vector<1x12x16xf32>
    %67 = vector.shape_cast %66 : vector<1x12x16xf32> to vector<12x16xf32>
    %cst_34 = arith.constant dense<0.000000e+00> : vector<12x12xf32>
    %68 = tpu.matmul %67, %17, %cst_34 {dimension_numbers = #tpu.dot_dimension_numbers<[1], [0], [0], [1], [0, 0, 1, 1], [], []>} : vector<12x16xf32>, vector<16x12xf32>, vector<12x12xf32> -> vector<12x12xf32>
    %cst_35 = arith.constant 4.46428585 : f32
    %69 = vector.broadcast %cst_35 : f32 to vector<12x12xf32>
    %70 = arith.mulf %68, %69 : vector<12x12xf32>
    %cst_36 = arith.constant -2.03571439 : f32
    %71 = vector.broadcast %cst_36 : f32 to vector<12x12xf32>
    %72 = arith.addf %70, %71 : vector<12x12xf32>
    %c0_37 = arith.constant 0 : index
    %c1_38 = arith.constant 1 : index
    %c0_39 = arith.constant 0 : index
    %c0_40 = arith.constant 0 : index
    %73 = vector.load %arg4[%c0_37, %c1_38, %c0_39, %c0_40] : memref<4x3x12x12xf32, #tpu.memory_space<vmem>>, vector<1x1x12x12xf32>
    %74 = vector.shape_cast %73 : vector<1x1x12x12xf32> to vector<12x12xf32>
    %75 = vector.shape_cast %72 : vector<12x12xf32> to vector<1x1x12x12xf32>
    tpu.vector_store %arg4[%c0_37, %c1_38, %c0_39, %c0_40], %75 {strides = array<i32>} : memref<4x3x12x12xf32, #tpu.memory_space<vmem>>, vector<1x1x12x12xf32>,
    %c0_41 = arith.constant 0 : index
    %c2 = arith.constant 2 : index
    %c0_42 = arith.constant 0 : index
    %c0_43 = arith.constant 0 : index
    %76 = vector.load %arg3[%c0_41, %c2, %c0_42, %c0_43] : memref<4x3x16x16xf32, #tpu.memory_space<vmem>>, vector<1x1x16x16xf32>
    %77 = vector.shape_cast %76 : vector<1x1x16x16xf32> to vector<16x16xf32>
    %78 = vector.extract_strided_slice %77 {offsets = [0, 0], sizes = [1, 16], strides = [1, 1]} : vector<16x16xf32> to vector<1x16xf32>
    %79 = vector.shape_cast %78 : vector<1x16xf32> to vector<1x16xf32>
    %80 = vector.broadcast %79 : vector<1x16xf32> to vector<8x16xf32>
    %c2_44 = arith.constant 2 : index
    %c0_45 = arith.constant 0 : index
    %c0_46 = arith.constant 0 : index
    %81 = vector.load %arg5[%c2_44, %c0_45, %c0_46] : memref<3x26x16xf32, #tpu.memory_space<vmem>>, vector<1x8x16xf32>
    %82 = vector.shape_cast %81 : vector<1x8x16xf32> to vector<8x16xf32>
    %83 = vector.shape_cast %80 : vector<8x16xf32> to vector<1x8x16xf32>
    tpu.vector_store %arg5[%c2_44, %c0_45, %c0_46], %83 {strides = array<i32>} : memref<3x26x16xf32, #tpu.memory_space<vmem>>, vector<1x8x16xf32>,
    %c2_47 = arith.constant 2 : index
    %c8_48 = arith.constant 8 : index
    %c0_49 = arith.constant 0 : index
    %84 = vector.load %arg5[%c2_47, %c8_48, %c0_49] : memref<3x26x16xf32, #tpu.memory_space<vmem>>, vector<1x16x16xf32>
    %85 = vector.shape_cast %84 : vector<1x16x16xf32> to vector<16x16xf32>
    %86 = vector.shape_cast %77 : vector<16x16xf32> to vector<1x16x16xf32>
    tpu.vector_store %arg5[%c2_47, %c8_48, %c0_49], %86 {strides = array<i32>} : memref<3x26x16xf32, #tpu.memory_space<vmem>>, vector<1x16x16xf32>,
    %87 = vector.extract_strided_slice %77 {offsets = [15, 0], sizes = [1, 16], strides = [1, 1]} : vector<16x16xf32> to vector<1x16xf32>
    %88 = vector.shape_cast %87 : vector<1x16xf32> to vector<1x16xf32>
    %89 = vector.broadcast %88 : vector<1x16xf32> to vector<2x16xf32>
    %c2_50 = arith.constant 2 : index
    %c24_51 = arith.constant 24 : index
    %c0_52 = arith.constant 0 : index
    %90 = vector.load %arg5[%c2_50, %c24_51, %c0_52] : memref<3x26x16xf32, #tpu.memory_space<vmem>>, vector<1x2x16xf32>
    %91 = vector.shape_cast %90 : vector<1x2x16xf32> to vector<2x16xf32>
    %92 = vector.shape_cast %89 : vector<2x16xf32> to vector<1x2x16xf32>
    tpu.vector_store %arg5[%c2_50, %c24_51, %c0_52], %92 {strides = array<i32>} : memref<3x26x16xf32, #tpu.memory_space<vmem>>, vector<1x2x16xf32>,
    %c6_i32_53 = arith.constant 6 : i32
    %93 = arith.addi %3, %c6_i32_53 : i32
    %c2_54 = arith.constant 2 : index
    %94 = arith.index_cast %93 : i32 to index
    %c0_55 = arith.constant 0 : index
    %95 = vector.load %arg5[%c2_54, %94, %c0_55] : memref<3x26x16xf32, #tpu.memory_space<vmem>>, vector<1x12x16xf32>
    %96 = vector.shape_cast %95 : vector<1x12x16xf32> to vector<12x16xf32>
    %cst_56 = arith.constant dense<0.000000e+00> : vector<12x12xf32>
    %97 = tpu.matmul %96, %17, %cst_56 {dimension_numbers = #tpu.dot_dimension_numbers<[1], [0], [0], [1], [0, 0, 1, 1], [], []>} : vector<12x16xf32>, vector<16x12xf32>, vector<12x12xf32> -> vector<12x12xf32>
    %cst_57 = arith.constant 4.44444466 : f32
    %98 = vector.broadcast %cst_57 : f32 to vector<12x12xf32>
    %99 = arith.mulf %97, %98 : vector<12x12xf32>
    %cst_58 = arith.constant -1.80444443 : f32
    %100 = vector.broadcast %cst_58 : f32 to vector<12x12xf32>
    %101 = arith.addf %99, %100 : vector<12x12xf32>
    %c0_59 = arith.constant 0 : index
    %c2_60 = arith.constant 2 : index
    %c0_61 = arith.constant 0 : index
    %c0_62 = arith.constant 0 : index
    %102 = vector.load %arg4[%c0_59, %c2_60, %c0_61, %c0_62] : memref<4x3x12x12xf32, #tpu.memory_space<vmem>>, vector<1x1x12x12xf32>
    %103 = vector.shape_cast %102 : vector<1x1x12x12xf32> to vector<12x12xf32>
    %104 = vector.shape_cast %101 : vector<12x12xf32> to vector<1x1x12x12xf32>
    tpu.vector_store %arg4[%c0_59, %c2_60, %c0_61, %c0_62], %104 {strides = array<i32>} : memref<4x3x12x12xf32, #tpu.memory_space<vmem>>, vector<1x1x12x12xf32>,
    %c4_i32_63 = arith.constant 4 : i32
    %105 = arith.muli %arg0, %c4_i32_63 : i32
    %c1_i32 = arith.constant 1 : i32
    %106 = arith.addi %105, %c1_i32 : i32
    %107 = arith.index_cast %106 : i32 to index
    %108 = memref.load %arg1[%107] : memref<4xi32, #tpu.memory_space<smem>>
    %109 = arith.index_cast %106 : i32 to index
    %110 = memref.load %arg2[%109] : memref<4xi32, #tpu.memory_space<smem>>
    %111 = tpu.iota {dimensions = array<i32: 0>} : vector<16x12xi32>
    %112 = tpu.iota {dimensions = array<i32: 1>} : vector<16x12xi32>
    %c2_i32_64 = arith.constant 2 : i32
    %113 = arith.subi %110, %c2_i32_64 : i32
    %114 = vector.broadcast %113 : i32 to vector<16x12xi32>
    %115 = arith.addi %112, %114 : vector<16x12xi32>
    %c0_i32_65 = arith.constant 0 : i32
    %c15_i32_66 = arith.constant 15 : i32
    %116 = vector.broadcast %c0_i32_65 : i32 to vector<16x12xi32>
    %117 = arith.maxsi %116, %115 : vector<16x12xi32>
    %118 = vector.broadcast %c15_i32_66 : i32 to vector<16x12xi32>
    %119 = arith.minsi %118, %117 : vector<16x12xi32>
    %120 = arith.cmpi eq, %111, %119 : vector<16x12xi32>
    %121 = arith.extui %120 : vector<16x12xi1> to vector<16x12xi32>
    %122 = arith.sitofp %121 : vector<16x12xi32> to vector<16x12xf32>
    %c1_67 = arith.constant 1 : index
    %c0_68 = arith.constant 0 : index
    %c0_69 = arith.constant 0 : index
    %c0_70 = arith.constant 0 : index
    %123 = vector.load %arg3[%c1_67, %c0_68, %c0_69, %c0_70] : memref<4x3x16x16xf32, #tpu.memory_space<vmem>>, vector<1x1x16x16xf32>
    %124 = vector.shape_cast %123 : vector<1x1x16x16xf32> to vector<16x16xf32>
    %125 = vector.extract_strided_slice %124 {offsets = [0, 0], sizes = [1, 16], strides = [1, 1]} : vector<16x16xf32> to vector<1x16xf32>
    %126 = vector.shape_cast %125 : vector<1x16xf32> to vector<1x16xf32>
    %127 = vector.broadcast %126 : vector<1x16xf32> to vector<8x16xf32>
    %c0_71 = arith.constant 0 : index
    %c0_72 = arith.constant 0 : index
    %c0_73 = arith.constant 0 : index
    %128 = vector.load %arg5[%c0_71, %c0_72, %c0_73] : memref<3x26x16xf32, #tpu.memory_space<vmem>>, vector<1x8x16xf32>
    %129 = vector.shape_cast %128 : vector<1x8x16xf32> to vector<8x16xf32>
    %130 = vector.shape_cast %127 : vector<8x16xf32> to vector<1x8x16xf32>
    tpu.vector_store %arg5[%c0_71, %c0_72, %c0_73], %130 {strides = array<i32>} : memref<3x26x16xf32, #tpu.memory_space<vmem>>, vector<1x8x16xf32>,
    %c0_74 = arith.constant 0 : index
    %c8_75 = arith.constant 8 : index
    %c0_76 = arith.constant 0 : index
    %131 = vector.load %arg5[%c0_74, %c8_75, %c0_76] : memref<3x26x16xf32, #tpu.memory_space<vmem>>, vector<1x16x16xf32>
    %132 = vector.shape_cast %131 : vector<1x16x16xf32> to vector<16x16xf32>
    %133 = vector.shape_cast %124 : vector<16x16xf32> to vector<1x16x16xf32>
    tpu.vector_store %arg5[%c0_74, %c8_75, %c0_76], %133 {strides = array<i32>} : memref<3x26x16xf32, #tpu.memory_space<vmem>>, vector<1x16x16xf32>,
    %134 = vector.extract_strided_slice %124 {offsets = [15, 0], sizes = [1, 16], strides = [1, 1]} : vector<16x16xf32> to vector<1x16xf32>
    %135 = vector.shape_cast %134 : vector<1x16xf32> to vector<1x16xf32>
    %136 = vector.broadcast %135 : vector<1x16xf32> to vector<2x16xf32>
    %c0_77 = arith.constant 0 : index
    %c24_78 = arith.constant 24 : index
    %c0_79 = arith.constant 0 : index
    %137 = vector.load %arg5[%c0_77, %c24_78, %c0_79] : memref<3x26x16xf32, #tpu.memory_space<vmem>>, vector<1x2x16xf32>
    %138 = vector.shape_cast %137 : vector<1x2x16xf32> to vector<2x16xf32>
    %139 = vector.shape_cast %136 : vector<2x16xf32> to vector<1x2x16xf32>
    tpu.vector_store %arg5[%c0_77, %c24_78, %c0_79], %139 {strides = array<i32>} : memref<3x26x16xf32, #tpu.memory_space<vmem>>, vector<1x2x16xf32>,
    %c6_i32_80 = arith.constant 6 : i32
    %140 = arith.addi %108, %c6_i32_80 : i32
    %c0_81 = arith.constant 0 : index
    %141 = arith.index_cast %140 : i32 to index
    %c0_82 = arith.constant 0 : index
    %142 = vector.load %arg5[%c0_81, %141, %c0_82] : memref<3x26x16xf32, #tpu.memory_space<vmem>>, vector<1x12x16xf32>
    %143 = vector.shape_cast %142 : vector<1x12x16xf32> to vector<12x16xf32>
    %cst_83 = arith.constant dense<0.000000e+00> : vector<12x12xf32>
    %144 = tpu.matmul %143, %122, %cst_83 {dimension_numbers = #tpu.dot_dimension_numbers<[1], [0], [0], [1], [0, 0, 1, 1], [], []>} : vector<12x16xf32>, vector<16x12xf32>, vector<12x12xf32> -> vector<12x12xf32>
    %cst_84 = arith.constant 4.36681223 : f32
    %145 = vector.broadcast %cst_84 : f32 to vector<12x12xf32>
    %146 = arith.mulf %144, %145 : vector<12x12xf32>
    %cst_85 = arith.constant -2.11790395 : f32
    %147 = vector.broadcast %cst_85 : f32 to vector<12x12xf32>
    %148 = arith.addf %146, %147 : vector<12x12xf32>
    %c1_86 = arith.constant 1 : index
    %c0_87 = arith.constant 0 : index
    %c0_88 = arith.constant 0 : index
    %c0_89 = arith.constant 0 : index
    %149 = vector.load %arg4[%c1_86, %c0_87, %c0_88, %c0_89] : memref<4x3x12x12xf32, #tpu.memory_space<vmem>>, vector<1x1x12x12xf32>
    %150 = vector.shape_cast %149 : vector<1x1x12x12xf32> to vector<12x12xf32>
    %151 = vector.shape_cast %148 : vector<12x12xf32> to vector<1x1x12x12xf32>
    tpu.vector_store %arg4[%c1_86, %c0_87, %c0_88, %c0_89], %151 {strides = array<i32>} : memref<4x3x12x12xf32, #tpu.memory_space<vmem>>, vector<1x1x12x12xf32>,
    %c1_90 = arith.constant 1 : index
    %c1_91 = arith.constant 1 : index
    %c0_92 = arith.constant 0 : index
    %c0_93 = arith.constant 0 : index
    %152 = vector.load %arg3[%c1_90, %c1_91, %c0_92, %c0_93] : memref<4x3x16x16xf32, #tpu.memory_space<vmem>>, vector<1x1x16x16xf32>
    %153 = vector.shape_cast %152 : vector<1x1x16x16xf32> to vector<16x16xf32>
    %154 = vector.extract_strided_slice %153 {offsets = [0, 0], sizes = [1, 16], strides = [1, 1]} : vector<16x16xf32> to vector<1x16xf32>
    %155 = vector.shape_cast %154 : vector<1x16xf32> to vector<1x16xf32>
    %156 = vector.broadcast %155 : vector<1x16xf32> to vector<8x16xf32>
    %c1_94 = arith.constant 1 : index
    %c0_95 = arith.constant 0 : index
    %c0_96 = arith.constant 0 : index
    %157 = vector.load %arg5[%c1_94, %c0_95, %c0_96] : memref<3x26x16xf32, #tpu.memory_space<vmem>>, vector<1x8x16xf32>
    %158 = vector.shape_cast %157 : vector<1x8x16xf32> to vector<8x16xf32>
    %159 = vector.shape_cast %156 : vector<8x16xf32> to vector<1x8x16xf32>
    tpu.vector_store %arg5[%c1_94, %c0_95, %c0_96], %159 {strides = array<i32>} : memref<3x26x16xf32, #tpu.memory_space<vmem>>, vector<1x8x16xf32>,
    %c1_97 = arith.constant 1 : index
    %c8_98 = arith.constant 8 : index
    %c0_99 = arith.constant 0 : index
    %160 = vector.load %arg5[%c1_97, %c8_98, %c0_99] : memref<3x26x16xf32, #tpu.memory_space<vmem>>, vector<1x16x16xf32>
    %161 = vector.shape_cast %160 : vector<1x16x16xf32> to vector<16x16xf32>
    %162 = vector.shape_cast %153 : vector<16x16xf32> to vector<1x16x16xf32>
    tpu.vector_store %arg5[%c1_97, %c8_98, %c0_99], %162 {strides = array<i32>} : memref<3x26x16xf32, #tpu.memory_space<vmem>>, vector<1x16x16xf32>,
    %163 = vector.extract_strided_slice %153 {offsets = [15, 0], sizes = [1, 16], strides = [1, 1]} : vector<16x16xf32> to vector<1x16xf32>
    %164 = vector.shape_cast %163 : vector<1x16xf32> to vector<1x16xf32>
    %165 = vector.broadcast %164 : vector<1x16xf32> to vector<2x16xf32>
    %c1_100 = arith.constant 1 : index
    %c24_101 = arith.constant 24 : index
    %c0_102 = arith.constant 0 : index
    %166 = vector.load %arg5[%c1_100, %c24_101, %c0_102] : memref<3x26x16xf32, #tpu.memory_space<vmem>>, vector<1x2x16xf32>
    %167 = vector.shape_cast %166 : vector<1x2x16xf32> to vector<2x16xf32>
    %168 = vector.shape_cast %165 : vector<2x16xf32> to vector<1x2x16xf32>
    tpu.vector_store %arg5[%c1_100, %c24_101, %c0_102], %168 {strides = array<i32>} : memref<3x26x16xf32, #tpu.memory_space<vmem>>, vector<1x2x16xf32>,
    %c6_i32_103 = arith.constant 6 : i32
    %169 = arith.addi %108, %c6_i32_103 : i32
    %c1_104 = arith.constant 1 : index
    %170 = arith.index_cast %169 : i32 to index
    %c0_105 = arith.constant 0 : index
    %171 = vector.load %arg5[%c1_104, %170, %c0_105] : memref<3x26x16xf32, #tpu.memory_space<vmem>>, vector<1x12x16xf32>
    %172 = vector.shape_cast %171 : vector<1x12x16xf32> to vector<12x16xf32>
    %cst_106 = arith.constant dense<0.000000e+00> : vector<12x12xf32>
    %173 = tpu.matmul %172, %122, %cst_106 {dimension_numbers = #tpu.dot_dimension_numbers<[1], [0], [0], [1], [0, 0, 1, 1], [], []>} : vector<12x16xf32>, vector<16x12xf32>, vector<12x12xf32> -> vector<12x12xf32>
    %cst_107 = arith.constant 4.46428585 : f32
    %174 = vector.broadcast %cst_107 : f32 to vector<12x12xf32>
    %175 = arith.mulf %173, %174 : vector<12x12xf32>
    %cst_108 = arith.constant -2.03571439 : f32
    %176 = vector.broadcast %cst_108 : f32 to vector<12x12xf32>
    %177 = arith.addf %175, %176 : vector<12x12xf32>
    %c1_109 = arith.constant 1 : index
    %c1_110 = arith.constant 1 : index
    %c0_111 = arith.constant 0 : index
    %c0_112 = arith.constant 0 : index
    %178 = vector.load %arg4[%c1_109, %c1_110, %c0_111, %c0_112] : memref<4x3x12x12xf32, #tpu.memory_space<vmem>>, vector<1x1x12x12xf32>
    %179 = vector.shape_cast %178 : vector<1x1x12x12xf32> to vector<12x12xf32>
    %180 = vector.shape_cast %177 : vector<12x12xf32> to vector<1x1x12x12xf32>
    tpu.vector_store %arg4[%c1_109, %c1_110, %c0_111, %c0_112], %180 {strides = array<i32>} : memref<4x3x12x12xf32, #tpu.memory_space<vmem>>, vector<1x1x12x12xf32>,
    %c1_113 = arith.constant 1 : index
    %c2_114 = arith.constant 2 : index
    %c0_115 = arith.constant 0 : index
    %c0_116 = arith.constant 0 : index
    %181 = vector.load %arg3[%c1_113, %c2_114, %c0_115, %c0_116] : memref<4x3x16x16xf32, #tpu.memory_space<vmem>>, vector<1x1x16x16xf32>
    %182 = vector.shape_cast %181 : vector<1x1x16x16xf32> to vector<16x16xf32>
    %183 = vector.extract_strided_slice %182 {offsets = [0, 0], sizes = [1, 16], strides = [1, 1]} : vector<16x16xf32> to vector<1x16xf32>
    %184 = vector.shape_cast %183 : vector<1x16xf32> to vector<1x16xf32>
    %185 = vector.broadcast %184 : vector<1x16xf32> to vector<8x16xf32>
    %c2_117 = arith.constant 2 : index
    %c0_118 = arith.constant 0 : index
    %c0_119 = arith.constant 0 : index
    %186 = vector.load %arg5[%c2_117, %c0_118, %c0_119] : memref<3x26x16xf32, #tpu.memory_space<vmem>>, vector<1x8x16xf32>
    %187 = vector.shape_cast %186 : vector<1x8x16xf32> to vector<8x16xf32>
    %188 = vector.shape_cast %185 : vector<8x16xf32> to vector<1x8x16xf32>
    tpu.vector_store %arg5[%c2_117, %c0_118, %c0_119], %188 {strides = array<i32>} : memref<3x26x16xf32, #tpu.memory_space<vmem>>, vector<1x8x16xf32>,
    %c2_120 = arith.constant 2 : index
    %c8_121 = arith.constant 8 : index
    %c0_122 = arith.constant 0 : index
    %189 = vector.load %arg5[%c2_120, %c8_121, %c0_122] : memref<3x26x16xf32, #tpu.memory_space<vmem>>, vector<1x16x16xf32>
    %190 = vector.shape_cast %189 : vector<1x16x16xf32> to vector<16x16xf32>
    %191 = vector.shape_cast %182 : vector<16x16xf32> to vector<1x16x16xf32>
    tpu.vector_store %arg5[%c2_120, %c8_121, %c0_122], %191 {strides = array<i32>} : memref<3x26x16xf32, #tpu.memory_space<vmem>>, vector<1x16x16xf32>,
    %192 = vector.extract_strided_slice %182 {offsets = [15, 0], sizes = [1, 16], strides = [1, 1]} : vector<16x16xf32> to vector<1x16xf32>
    %193 = vector.shape_cast %192 : vector<1x16xf32> to vector<1x16xf32>
    %194 = vector.broadcast %193 : vector<1x16xf32> to vector<2x16xf32>
    %c2_123 = arith.constant 2 : index
    %c24_124 = arith.constant 24 : index
    %c0_125 = arith.constant 0 : index
    %195 = vector.load %arg5[%c2_123, %c24_124, %c0_125] : memref<3x26x16xf32, #tpu.memory_space<vmem>>, vector<1x2x16xf32>
    %196 = vector.shape_cast %195 : vector<1x2x16xf32> to vector<2x16xf32>
    %197 = vector.shape_cast %194 : vector<2x16xf32> to vector<1x2x16xf32>
    tpu.vector_store %arg5[%c2_123, %c24_124, %c0_125], %197 {strides = array<i32>} : memref<3x26x16xf32, #tpu.memory_space<vmem>>, vector<1x2x16xf32>,
    %c6_i32_126 = arith.constant 6 : i32
    %198 = arith.addi %108, %c6_i32_126 : i32
    %c2_127 = arith.constant 2 : index
    %199 = arith.index_cast %198 : i32 to index
    %c0_128 = arith.constant 0 : index
    %200 = vector.load %arg5[%c2_127, %199, %c0_128] : memref<3x26x16xf32, #tpu.memory_space<vmem>>, vector<1x12x16xf32>
    %201 = vector.shape_cast %200 : vector<1x12x16xf32> to vector<12x16xf32>
    %cst_129 = arith.constant dense<0.000000e+00> : vector<12x12xf32>
    %202 = tpu.matmul %201, %122, %cst_129 {dimension_numbers = #tpu.dot_dimension_numbers<[1], [0], [0], [1], [0, 0, 1, 1], [], []>} : vector<12x16xf32>, vector<16x12xf32>, vector<12x12xf32> -> vector<12x12xf32>
    %cst_130 = arith.constant 4.44444466 : f32
    %203 = vector.broadcast %cst_130 : f32 to vector<12x12xf32>
    %204 = arith.mulf %202, %203 : vector<12x12xf32>
    %cst_131 = arith.constant -1.80444443 : f32
    %205 = vector.broadcast %cst_131 : f32 to vector<12x12xf32>
    %206 = arith.addf %204, %205 : vector<12x12xf32>
    %c1_132 = arith.constant 1 : index
    %c2_133 = arith.constant 2 : index
    %c0_134 = arith.constant 0 : index
    %c0_135 = arith.constant 0 : index
    %207 = vector.load %arg4[%c1_132, %c2_133, %c0_134, %c0_135] : memref<4x3x12x12xf32, #tpu.memory_space<vmem>>, vector<1x1x12x12xf32>
    %208 = vector.shape_cast %207 : vector<1x1x12x12xf32> to vector<12x12xf32>
    %209 = vector.shape_cast %206 : vector<12x12xf32> to vector<1x1x12x12xf32>
    tpu.vector_store %arg4[%c1_132, %c2_133, %c0_134, %c0_135], %209 {strides = array<i32>} : memref<4x3x12x12xf32, #tpu.memory_space<vmem>>, vector<1x1x12x12xf32>,
    %c4_i32_136 = arith.constant 4 : i32
    %210 = arith.muli %arg0, %c4_i32_136 : i32
    %c2_i32_137 = arith.constant 2 : i32
    %211 = arith.addi %210, %c2_i32_137 : i32
    %212 = arith.index_cast %211 : i32 to index
    %213 = memref.load %arg1[%212] : memref<4xi32, #tpu.memory_space<smem>>
    %214 = arith.index_cast %211 : i32 to index
    %215 = memref.load %arg2[%214] : memref<4xi32, #tpu.memory_space<smem>>
    %216 = tpu.iota {dimensions = array<i32: 0>} : vector<16x12xi32>
    %217 = tpu.iota {dimensions = array<i32: 1>} : vector<16x12xi32>
    %c2_i32_138 = arith.constant 2 : i32
    %218 = arith.subi %215, %c2_i32_138 : i32
    %219 = vector.broadcast %218 : i32 to vector<16x12xi32>
    %220 = arith.addi %217, %219 : vector<16x12xi32>
    %c0_i32_139 = arith.constant 0 : i32
    %c15_i32_140 = arith.constant 15 : i32
    %221 = vector.broadcast %c0_i32_139 : i32 to vector<16x12xi32>
    %222 = arith.maxsi %221, %220 : vector<16x12xi32>
    %223 = vector.broadcast %c15_i32_140 : i32 to vector<16x12xi32>
    %224 = arith.minsi %223, %222 : vector<16x12xi32>
    %225 = arith.cmpi eq, %216, %224 : vector<16x12xi32>
    %226 = arith.extui %225 : vector<16x12xi1> to vector<16x12xi32>
    %227 = arith.sitofp %226 : vector<16x12xi32> to vector<16x12xf32>
    %c2_141 = arith.constant 2 : index
    %c0_142 = arith.constant 0 : index
    %c0_143 = arith.constant 0 : index
    %c0_144 = arith.constant 0 : index
    %228 = vector.load %arg3[%c2_141, %c0_142, %c0_143, %c0_144] : memref<4x3x16x16xf32, #tpu.memory_space<vmem>>, vector<1x1x16x16xf32>
    %229 = vector.shape_cast %228 : vector<1x1x16x16xf32> to vector<16x16xf32>
    %230 = vector.extract_strided_slice %229 {offsets = [0, 0], sizes = [1, 16], strides = [1, 1]} : vector<16x16xf32> to vector<1x16xf32>
    %231 = vector.shape_cast %230 : vector<1x16xf32> to vector<1x16xf32>
    %232 = vector.broadcast %231 : vector<1x16xf32> to vector<8x16xf32>
    %c0_145 = arith.constant 0 : index
    %c0_146 = arith.constant 0 : index
    %c0_147 = arith.constant 0 : index
    %233 = vector.load %arg5[%c0_145, %c0_146, %c0_147] : memref<3x26x16xf32, #tpu.memory_space<vmem>>, vector<1x8x16xf32>
    %234 = vector.shape_cast %233 : vector<1x8x16xf32> to vector<8x16xf32>
    %235 = vector.shape_cast %232 : vector<8x16xf32> to vector<1x8x16xf32>
    tpu.vector_store %arg5[%c0_145, %c0_146, %c0_147], %235 {strides = array<i32>} : memref<3x26x16xf32, #tpu.memory_space<vmem>>, vector<1x8x16xf32>,
    %c0_148 = arith.constant 0 : index
    %c8_149 = arith.constant 8 : index
    %c0_150 = arith.constant 0 : index
    %236 = vector.load %arg5[%c0_148, %c8_149, %c0_150] : memref<3x26x16xf32, #tpu.memory_space<vmem>>, vector<1x16x16xf32>
    %237 = vector.shape_cast %236 : vector<1x16x16xf32> to vector<16x16xf32>
    %238 = vector.shape_cast %229 : vector<16x16xf32> to vector<1x16x16xf32>
    tpu.vector_store %arg5[%c0_148, %c8_149, %c0_150], %238 {strides = array<i32>} : memref<3x26x16xf32, #tpu.memory_space<vmem>>, vector<1x16x16xf32>,
    %239 = vector.extract_strided_slice %229 {offsets = [15, 0], sizes = [1, 16], strides = [1, 1]} : vector<16x16xf32> to vector<1x16xf32>
    %240 = vector.shape_cast %239 : vector<1x16xf32> to vector<1x16xf32>
    %241 = vector.broadcast %240 : vector<1x16xf32> to vector<2x16xf32>
    %c0_151 = arith.constant 0 : index
    %c24_152 = arith.constant 24 : index
    %c0_153 = arith.constant 0 : index
    %242 = vector.load %arg5[%c0_151, %c24_152, %c0_153] : memref<3x26x16xf32, #tpu.memory_space<vmem>>, vector<1x2x16xf32>
    %243 = vector.shape_cast %242 : vector<1x2x16xf32> to vector<2x16xf32>
    %244 = vector.shape_cast %241 : vector<2x16xf32> to vector<1x2x16xf32>
    tpu.vector_store %arg5[%c0_151, %c24_152, %c0_153], %244 {strides = array<i32>} : memref<3x26x16xf32, #tpu.memory_space<vmem>>, vector<1x2x16xf32>,
    %c6_i32_154 = arith.constant 6 : i32
    %245 = arith.addi %213, %c6_i32_154 : i32
    %c0_155 = arith.constant 0 : index
    %246 = arith.index_cast %245 : i32 to index
    %c0_156 = arith.constant 0 : index
    %247 = vector.load %arg5[%c0_155, %246, %c0_156] : memref<3x26x16xf32, #tpu.memory_space<vmem>>, vector<1x12x16xf32>
    %248 = vector.shape_cast %247 : vector<1x12x16xf32> to vector<12x16xf32>
    %cst_157 = arith.constant dense<0.000000e+00> : vector<12x12xf32>
    %249 = tpu.matmul %248, %227, %cst_157 {dimension_numbers = #tpu.dot_dimension_numbers<[1], [0], [0], [1], [0, 0, 1, 1], [], []>} : vector<12x16xf32>, vector<16x12xf32>, vector<12x12xf32> -> vector<12x12xf32>
    %cst_158 = arith.constant 4.36681223 : f32
    %250 = vector.broadcast %cst_158 : f32 to vector<12x12xf32>
    %251 = arith.mulf %249, %250 : vector<12x12xf32>
    %cst_159 = arith.constant -2.11790395 : f32
    %252 = vector.broadcast %cst_159 : f32 to vector<12x12xf32>
    %253 = arith.addf %251, %252 : vector<12x12xf32>
    %c2_160 = arith.constant 2 : index
    %c0_161 = arith.constant 0 : index
    %c0_162 = arith.constant 0 : index
    %c0_163 = arith.constant 0 : index
    %254 = vector.load %arg4[%c2_160, %c0_161, %c0_162, %c0_163] : memref<4x3x12x12xf32, #tpu.memory_space<vmem>>, vector<1x1x12x12xf32>
    %255 = vector.shape_cast %254 : vector<1x1x12x12xf32> to vector<12x12xf32>
    %256 = vector.shape_cast %253 : vector<12x12xf32> to vector<1x1x12x12xf32>
    tpu.vector_store %arg4[%c2_160, %c0_161, %c0_162, %c0_163], %256 {strides = array<i32>} : memref<4x3x12x12xf32, #tpu.memory_space<vmem>>, vector<1x1x12x12xf32>,
    %c2_164 = arith.constant 2 : index
    %c1_165 = arith.constant 1 : index
    %c0_166 = arith.constant 0 : index
    %c0_167 = arith.constant 0 : index
    %257 = vector.load %arg3[%c2_164, %c1_165, %c0_166, %c0_167] : memref<4x3x16x16xf32, #tpu.memory_space<vmem>>, vector<1x1x16x16xf32>
    %258 = vector.shape_cast %257 : vector<1x1x16x16xf32> to vector<16x16xf32>
    %259 = vector.extract_strided_slice %258 {offsets = [0, 0], sizes = [1, 16], strides = [1, 1]} : vector<16x16xf32> to vector<1x16xf32>
    %260 = vector.shape_cast %259 : vector<1x16xf32> to vector<1x16xf32>
    %261 = vector.broadcast %260 : vector<1x16xf32> to vector<8x16xf32>
    %c1_168 = arith.constant 1 : index
    %c0_169 = arith.constant 0 : index
    %c0_170 = arith.constant 0 : index
    %262 = vector.load %arg5[%c1_168, %c0_169, %c0_170] : memref<3x26x16xf32, #tpu.memory_space<vmem>>, vector<1x8x16xf32>
    %263 = vector.shape_cast %262 : vector<1x8x16xf32> to vector<8x16xf32>
    %264 = vector.shape_cast %261 : vector<8x16xf32> to vector<1x8x16xf32>
    tpu.vector_store %arg5[%c1_168, %c0_169, %c0_170], %264 {strides = array<i32>} : memref<3x26x16xf32, #tpu.memory_space<vmem>>, vector<1x8x16xf32>,
    %c1_171 = arith.constant 1 : index
    %c8_172 = arith.constant 8 : index
    %c0_173 = arith.constant 0 : index
    %265 = vector.load %arg5[%c1_171, %c8_172, %c0_173] : memref<3x26x16xf32, #tpu.memory_space<vmem>>, vector<1x16x16xf32>
    %266 = vector.shape_cast %265 : vector<1x16x16xf32> to vector<16x16xf32>
    %267 = vector.shape_cast %258 : vector<16x16xf32> to vector<1x16x16xf32>
    tpu.vector_store %arg5[%c1_171, %c8_172, %c0_173], %267 {strides = array<i32>} : memref<3x26x16xf32, #tpu.memory_space<vmem>>, vector<1x16x16xf32>,
    %268 = vector.extract_strided_slice %258 {offsets = [15, 0], sizes = [1, 16], strides = [1, 1]} : vector<16x16xf32> to vector<1x16xf32>
    %269 = vector.shape_cast %268 : vector<1x16xf32> to vector<1x16xf32>
    %270 = vector.broadcast %269 : vector<1x16xf32> to vector<2x16xf32>
    %c1_174 = arith.constant 1 : index
    %c24_175 = arith.constant 24 : index
    %c0_176 = arith.constant 0 : index
    %271 = vector.load %arg5[%c1_174, %c24_175, %c0_176] : memref<3x26x16xf32, #tpu.memory_space<vmem>>, vector<1x2x16xf32>
    %272 = vector.shape_cast %271 : vector<1x2x16xf32> to vector<2x16xf32>
    %273 = vector.shape_cast %270 : vector<2x16xf32> to vector<1x2x16xf32>
    tpu.vector_store %arg5[%c1_174, %c24_175, %c0_176], %273 {strides = array<i32>} : memref<3x26x16xf32, #tpu.memory_space<vmem>>, vector<1x2x16xf32>,
    %c6_i32_177 = arith.constant 6 : i32
    %274 = arith.addi %213, %c6_i32_177 : i32
    %c1_178 = arith.constant 1 : index
    %275 = arith.index_cast %274 : i32 to index
    %c0_179 = arith.constant 0 : index
    %276 = vector.load %arg5[%c1_178, %275, %c0_179] : memref<3x26x16xf32, #tpu.memory_space<vmem>>, vector<1x12x16xf32>
    %277 = vector.shape_cast %276 : vector<1x12x16xf32> to vector<12x16xf32>
    %cst_180 = arith.constant dense<0.000000e+00> : vector<12x12xf32>
    %278 = tpu.matmul %277, %227, %cst_180 {dimension_numbers = #tpu.dot_dimension_numbers<[1], [0], [0], [1], [0, 0, 1, 1], [], []>} : vector<12x16xf32>, vector<16x12xf32>, vector<12x12xf32> -> vector<12x12xf32>
    %cst_181 = arith.constant 4.46428585 : f32
    %279 = vector.broadcast %cst_181 : f32 to vector<12x12xf32>
    %280 = arith.mulf %278, %279 : vector<12x12xf32>
    %cst_182 = arith.constant -2.03571439 : f32
    %281 = vector.broadcast %cst_182 : f32 to vector<12x12xf32>
    %282 = arith.addf %280, %281 : vector<12x12xf32>
    %c2_183 = arith.constant 2 : index
    %c1_184 = arith.constant 1 : index
    %c0_185 = arith.constant 0 : index
    %c0_186 = arith.constant 0 : index
    %283 = vector.load %arg4[%c2_183, %c1_184, %c0_185, %c0_186] : memref<4x3x12x12xf32, #tpu.memory_space<vmem>>, vector<1x1x12x12xf32>
    %284 = vector.shape_cast %283 : vector<1x1x12x12xf32> to vector<12x12xf32>
    %285 = vector.shape_cast %282 : vector<12x12xf32> to vector<1x1x12x12xf32>
    tpu.vector_store %arg4[%c2_183, %c1_184, %c0_185, %c0_186], %285 {strides = array<i32>} : memref<4x3x12x12xf32, #tpu.memory_space<vmem>>, vector<1x1x12x12xf32>,
    %c2_187 = arith.constant 2 : index
    %c2_188 = arith.constant 2 : index
    %c0_189 = arith.constant 0 : index
    %c0_190 = arith.constant 0 : index
    %286 = vector.load %arg3[%c2_187, %c2_188, %c0_189, %c0_190] : memref<4x3x16x16xf32, #tpu.memory_space<vmem>>, vector<1x1x16x16xf32>
    %287 = vector.shape_cast %286 : vector<1x1x16x16xf32> to vector<16x16xf32>
    %288 = vector.extract_strided_slice %287 {offsets = [0, 0], sizes = [1, 16], strides = [1, 1]} : vector<16x16xf32> to vector<1x16xf32>
    %289 = vector.shape_cast %288 : vector<1x16xf32> to vector<1x16xf32>
    %290 = vector.broadcast %289 : vector<1x16xf32> to vector<8x16xf32>
    %c2_191 = arith.constant 2 : index
    %c0_192 = arith.constant 0 : index
    %c0_193 = arith.constant 0 : index
    %291 = vector.load %arg5[%c2_191, %c0_192, %c0_193] : memref<3x26x16xf32, #tpu.memory_space<vmem>>, vector<1x8x16xf32>
    %292 = vector.shape_cast %291 : vector<1x8x16xf32> to vector<8x16xf32>
    %293 = vector.shape_cast %290 : vector<8x16xf32> to vector<1x8x16xf32>
    tpu.vector_store %arg5[%c2_191, %c0_192, %c0_193], %293 {strides = array<i32>} : memref<3x26x16xf32, #tpu.memory_space<vmem>>, vector<1x8x16xf32>,
    %c2_194 = arith.constant 2 : index
    %c8_195 = arith.constant 8 : index
    %c0_196 = arith.constant 0 : index
    %294 = vector.load %arg5[%c2_194, %c8_195, %c0_196] : memref<3x26x16xf32, #tpu.memory_space<vmem>>, vector<1x16x16xf32>
    %295 = vector.shape_cast %294 : vector<1x16x16xf32> to vector<16x16xf32>
    %296 = vector.shape_cast %287 : vector<16x16xf32> to vector<1x16x16xf32>
    tpu.vector_store %arg5[%c2_194, %c8_195, %c0_196], %296 {strides = array<i32>} : memref<3x26x16xf32, #tpu.memory_space<vmem>>, vector<1x16x16xf32>,
    %297 = vector.extract_strided_slice %287 {offsets = [15, 0], sizes = [1, 16], strides = [1, 1]} : vector<16x16xf32> to vector<1x16xf32>
    %298 = vector.shape_cast %297 : vector<1x16xf32> to vector<1x16xf32>
    %299 = vector.broadcast %298 : vector<1x16xf32> to vector<2x16xf32>
    %c2_197 = arith.constant 2 : index
    %c24_198 = arith.constant 24 : index
    %c0_199 = arith.constant 0 : index
    %300 = vector.load %arg5[%c2_197, %c24_198, %c0_199] : memref<3x26x16xf32, #tpu.memory_space<vmem>>, vector<1x2x16xf32>
    %301 = vector.shape_cast %300 : vector<1x2x16xf32> to vector<2x16xf32>
    %302 = vector.shape_cast %299 : vector<2x16xf32> to vector<1x2x16xf32>
    tpu.vector_store %arg5[%c2_197, %c24_198, %c0_199], %302 {strides = array<i32>} : memref<3x26x16xf32, #tpu.memory_space<vmem>>, vector<1x2x16xf32>,
    %c6_i32_200 = arith.constant 6 : i32
    %303 = arith.addi %213, %c6_i32_200 : i32
    %c2_201 = arith.constant 2 : index
    %304 = arith.index_cast %303 : i32 to index
    %c0_202 = arith.constant 0 : index
    %305 = vector.load %arg5[%c2_201, %304, %c0_202] : memref<3x26x16xf32, #tpu.memory_space<vmem>>, vector<1x12x16xf32>
    %306 = vector.shape_cast %305 : vector<1x12x16xf32> to vector<12x16xf32>
    %cst_203 = arith.constant dense<0.000000e+00> : vector<12x12xf32>
    %307 = tpu.matmul %306, %227, %cst_203 {dimension_numbers = #tpu.dot_dimension_numbers<[1], [0], [0], [1], [0, 0, 1, 1], [], []>} : vector<12x16xf32>, vector<16x12xf32>, vector<12x12xf32> -> vector<12x12xf32>
    %cst_204 = arith.constant 4.44444466 : f32
    %308 = vector.broadcast %cst_204 : f32 to vector<12x12xf32>
    %309 = arith.mulf %307, %308 : vector<12x12xf32>
    %cst_205 = arith.constant -1.80444443 : f32
    %310 = vector.broadcast %cst_205 : f32 to vector<12x12xf32>
    %311 = arith.addf %309, %310 : vector<12x12xf32>
    %c2_206 = arith.constant 2 : index
    %c2_207 = arith.constant 2 : index
    %c0_208 = arith.constant 0 : index
    %c0_209 = arith.constant 0 : index
    %312 = vector.load %arg4[%c2_206, %c2_207, %c0_208, %c0_209] : memref<4x3x12x12xf32, #tpu.memory_space<vmem>>, vector<1x1x12x12xf32>
    %313 = vector.shape_cast %312 : vector<1x1x12x12xf32> to vector<12x12xf32>
    %314 = vector.shape_cast %311 : vector<12x12xf32> to vector<1x1x12x12xf32>
    tpu.vector_store %arg4[%c2_206, %c2_207, %c0_208, %c0_209], %314 {strides = array<i32>} : memref<4x3x12x12xf32, #tpu.memory_space<vmem>>, vector<1x1x12x12xf32>,
    %c4_i32_210 = arith.constant 4 : i32
    %315 = arith.muli %arg0, %c4_i32_210 : i32
    %c3_i32 = arith.constant 3 : i32
    %316 = arith.addi %315, %c3_i32 : i32
    %317 = arith.index_cast %316 : i32 to index
    %318 = memref.load %arg1[%317] : memref<4xi32, #tpu.memory_space<smem>>
    %319 = arith.index_cast %316 : i32 to index
    %320 = memref.load %arg2[%319] : memref<4xi32, #tpu.memory_space<smem>>
    %321 = tpu.iota {dimensions = array<i32: 0>} : vector<16x12xi32>
    %322 = tpu.iota {dimensions = array<i32: 1>} : vector<16x12xi32>
    %c2_i32_211 = arith.constant 2 : i32
    %323 = arith.subi %320, %c2_i32_211 : i32
    %324 = vector.broadcast %323 : i32 to vector<16x12xi32>
    %325 = arith.addi %322, %324 : vector<16x12xi32>
    %c0_i32_212 = arith.constant 0 : i32
    %c15_i32_213 = arith.constant 15 : i32
    %326 = vector.broadcast %c0_i32_212 : i32 to vector<16x12xi32>
    %327 = arith.maxsi %326, %325 : vector<16x12xi32>
    %328 = vector.broadcast %c15_i32_213 : i32 to vector<16x12xi32>
    %329 = arith.minsi %328, %327 : vector<16x12xi32>
    %330 = arith.cmpi eq, %321, %329 : vector<16x12xi32>
    %331 = arith.extui %330 : vector<16x12xi1> to vector<16x12xi32>
    %332 = arith.sitofp %331 : vector<16x12xi32> to vector<16x12xf32>
    %c3 = arith.constant 3 : index
    %c0_214 = arith.constant 0 : index
    %c0_215 = arith.constant 0 : index
    %c0_216 = arith.constant 0 : index
    %333 = vector.load %arg3[%c3, %c0_214, %c0_215, %c0_216] : memref<4x3x16x16xf32, #tpu.memory_space<vmem>>, vector<1x1x16x16xf32>
    %334 = vector.shape_cast %333 : vector<1x1x16x16xf32> to vector<16x16xf32>
    %335 = vector.extract_strided_slice %334 {offsets = [0, 0], sizes = [1, 16], strides = [1, 1]} : vector<16x16xf32> to vector<1x16xf32>
    %336 = vector.shape_cast %335 : vector<1x16xf32> to vector<1x16xf32>
    %337 = vector.broadcast %336 : vector<1x16xf32> to vector<8x16xf32>
    %c0_217 = arith.constant 0 : index
    %c0_218 = arith.constant 0 : index
    %c0_219 = arith.constant 0 : index
    %338 = vector.load %arg5[%c0_217, %c0_218, %c0_219] : memref<3x26x16xf32, #tpu.memory_space<vmem>>, vector<1x8x16xf32>
    %339 = vector.shape_cast %338 : vector<1x8x16xf32> to vector<8x16xf32>
    %340 = vector.shape_cast %337 : vector<8x16xf32> to vector<1x8x16xf32>
    tpu.vector_store %arg5[%c0_217, %c0_218, %c0_219], %340 {strides = array<i32>} : memref<3x26x16xf32, #tpu.memory_space<vmem>>, vector<1x8x16xf32>,
    %c0_220 = arith.constant 0 : index
    %c8_221 = arith.constant 8 : index
    %c0_222 = arith.constant 0 : index
    %341 = vector.load %arg5[%c0_220, %c8_221, %c0_222] : memref<3x26x16xf32, #tpu.memory_space<vmem>>, vector<1x16x16xf32>
    %342 = vector.shape_cast %341 : vector<1x16x16xf32> to vector<16x16xf32>
    %343 = vector.shape_cast %334 : vector<16x16xf32> to vector<1x16x16xf32>
    tpu.vector_store %arg5[%c0_220, %c8_221, %c0_222], %343 {strides = array<i32>} : memref<3x26x16xf32, #tpu.memory_space<vmem>>, vector<1x16x16xf32>,
    %344 = vector.extract_strided_slice %334 {offsets = [15, 0], sizes = [1, 16], strides = [1, 1]} : vector<16x16xf32> to vector<1x16xf32>
    %345 = vector.shape_cast %344 : vector<1x16xf32> to vector<1x16xf32>
    %346 = vector.broadcast %345 : vector<1x16xf32> to vector<2x16xf32>
    %c0_223 = arith.constant 0 : index
    %c24_224 = arith.constant 24 : index
    %c0_225 = arith.constant 0 : index
    %347 = vector.load %arg5[%c0_223, %c24_224, %c0_225] : memref<3x26x16xf32, #tpu.memory_space<vmem>>, vector<1x2x16xf32>
    %348 = vector.shape_cast %347 : vector<1x2x16xf32> to vector<2x16xf32>
    %349 = vector.shape_cast %346 : vector<2x16xf32> to vector<1x2x16xf32>
    tpu.vector_store %arg5[%c0_223, %c24_224, %c0_225], %349 {strides = array<i32>} : memref<3x26x16xf32, #tpu.memory_space<vmem>>, vector<1x2x16xf32>,
    %c6_i32_226 = arith.constant 6 : i32
    %350 = arith.addi %318, %c6_i32_226 : i32
    %c0_227 = arith.constant 0 : index
    %351 = arith.index_cast %350 : i32 to index
    %c0_228 = arith.constant 0 : index
    %352 = vector.load %arg5[%c0_227, %351, %c0_228] : memref<3x26x16xf32, #tpu.memory_space<vmem>>, vector<1x12x16xf32>
    %353 = vector.shape_cast %352 : vector<1x12x16xf32> to vector<12x16xf32>
    %cst_229 = arith.constant dense<0.000000e+00> : vector<12x12xf32>
    %354 = tpu.matmul %353, %332, %cst_229 {dimension_numbers = #tpu.dot_dimension_numbers<[1], [0], [0], [1], [0, 0, 1, 1], [], []>} : vector<12x16xf32>, vector<16x12xf32>, vector<12x12xf32> -> vector<12x12xf32>
    %cst_230 = arith.constant 4.36681223 : f32
    %355 = vector.broadcast %cst_230 : f32 to vector<12x12xf32>
    %356 = arith.mulf %354, %355 : vector<12x12xf32>
    %cst_231 = arith.constant -2.11790395 : f32
    %357 = vector.broadcast %cst_231 : f32 to vector<12x12xf32>
    %358 = arith.addf %356, %357 : vector<12x12xf32>
    %c3_232 = arith.constant 3 : index
    %c0_233 = arith.constant 0 : index
    %c0_234 = arith.constant 0 : index
    %c0_235 = arith.constant 0 : index
    %359 = vector.load %arg4[%c3_232, %c0_233, %c0_234, %c0_235] : memref<4x3x12x12xf32, #tpu.memory_space<vmem>>, vector<1x1x12x12xf32>
    %360 = vector.shape_cast %359 : vector<1x1x12x12xf32> to vector<12x12xf32>
    %361 = vector.shape_cast %358 : vector<12x12xf32> to vector<1x1x12x12xf32>
    tpu.vector_store %arg4[%c3_232, %c0_233, %c0_234, %c0_235], %361 {strides = array<i32>} : memref<4x3x12x12xf32, #tpu.memory_space<vmem>>, vector<1x1x12x12xf32>,
    %c3_236 = arith.constant 3 : index
    %c1_237 = arith.constant 1 : index
    %c0_238 = arith.constant 0 : index
    %c0_239 = arith.constant 0 : index
    %362 = vector.load %arg3[%c3_236, %c1_237, %c0_238, %c0_239] : memref<4x3x16x16xf32, #tpu.memory_space<vmem>>, vector<1x1x16x16xf32>
    %363 = vector.shape_cast %362 : vector<1x1x16x16xf32> to vector<16x16xf32>
    %364 = vector.extract_strided_slice %363 {offsets = [0, 0], sizes = [1, 16], strides = [1, 1]} : vector<16x16xf32> to vector<1x16xf32>
    %365 = vector.shape_cast %364 : vector<1x16xf32> to vector<1x16xf32>
    %366 = vector.broadcast %365 : vector<1x16xf32> to vector<8x16xf32>
    %c1_240 = arith.constant 1 : index
    %c0_241 = arith.constant 0 : index
    %c0_242 = arith.constant 0 : index
    %367 = vector.load %arg5[%c1_240, %c0_241, %c0_242] : memref<3x26x16xf32, #tpu.memory_space<vmem>>, vector<1x8x16xf32>
    %368 = vector.shape_cast %367 : vector<1x8x16xf32> to vector<8x16xf32>
    %369 = vector.shape_cast %366 : vector<8x16xf32> to vector<1x8x16xf32>
    tpu.vector_store %arg5[%c1_240, %c0_241, %c0_242], %369 {strides = array<i32>} : memref<3x26x16xf32, #tpu.memory_space<vmem>>, vector<1x8x16xf32>,
    %c1_243 = arith.constant 1 : index
    %c8_244 = arith.constant 8 : index
    %c0_245 = arith.constant 0 : index
    %370 = vector.load %arg5[%c1_243, %c8_244, %c0_245] : memref<3x26x16xf32, #tpu.memory_space<vmem>>, vector<1x16x16xf32>
    %371 = vector.shape_cast %370 : vector<1x16x16xf32> to vector<16x16xf32>
    %372 = vector.shape_cast %363 : vector<16x16xf32> to vector<1x16x16xf32>
    tpu.vector_store %arg5[%c1_243, %c8_244, %c0_245], %372 {strides = array<i32>} : memref<3x26x16xf32, #tpu.memory_space<vmem>>, vector<1x16x16xf32>,
    %373 = vector.extract_strided_slice %363 {offsets = [15, 0], sizes = [1, 16], strides = [1, 1]} : vector<16x16xf32> to vector<1x16xf32>
    %374 = vector.shape_cast %373 : vector<1x16xf32> to vector<1x16xf32>
    %375 = vector.broadcast %374 : vector<1x16xf32> to vector<2x16xf32>
    %c1_246 = arith.constant 1 : index
    %c24_247 = arith.constant 24 : index
    %c0_248 = arith.constant 0 : index
    %376 = vector.load %arg5[%c1_246, %c24_247, %c0_248] : memref<3x26x16xf32, #tpu.memory_space<vmem>>, vector<1x2x16xf32>
    %377 = vector.shape_cast %376 : vector<1x2x16xf32> to vector<2x16xf32>
    %378 = vector.shape_cast %375 : vector<2x16xf32> to vector<1x2x16xf32>
    tpu.vector_store %arg5[%c1_246, %c24_247, %c0_248], %378 {strides = array<i32>} : memref<3x26x16xf32, #tpu.memory_space<vmem>>, vector<1x2x16xf32>,
    %c6_i32_249 = arith.constant 6 : i32
    %379 = arith.addi %318, %c6_i32_249 : i32
    %c1_250 = arith.constant 1 : index
    %380 = arith.index_cast %379 : i32 to index
    %c0_251 = arith.constant 0 : index
    %381 = vector.load %arg5[%c1_250, %380, %c0_251] : memref<3x26x16xf32, #tpu.memory_space<vmem>>, vector<1x12x16xf32>
    %382 = vector.shape_cast %381 : vector<1x12x16xf32> to vector<12x16xf32>
    %cst_252 = arith.constant dense<0.000000e+00> : vector<12x12xf32>
    %383 = tpu.matmul %382, %332, %cst_252 {dimension_numbers = #tpu.dot_dimension_numbers<[1], [0], [0], [1], [0, 0, 1, 1], [], []>} : vector<12x16xf32>, vector<16x12xf32>, vector<12x12xf32> -> vector<12x12xf32>
    %cst_253 = arith.constant 4.46428585 : f32
    %384 = vector.broadcast %cst_253 : f32 to vector<12x12xf32>
    %385 = arith.mulf %383, %384 : vector<12x12xf32>
    %cst_254 = arith.constant -2.03571439 : f32
    %386 = vector.broadcast %cst_254 : f32 to vector<12x12xf32>
    %387 = arith.addf %385, %386 : vector<12x12xf32>
    %c3_255 = arith.constant 3 : index
    %c1_256 = arith.constant 1 : index
    %c0_257 = arith.constant 0 : index
    %c0_258 = arith.constant 0 : index
    %388 = vector.load %arg4[%c3_255, %c1_256, %c0_257, %c0_258] : memref<4x3x12x12xf32, #tpu.memory_space<vmem>>, vector<1x1x12x12xf32>
    %389 = vector.shape_cast %388 : vector<1x1x12x12xf32> to vector<12x12xf32>
    %390 = vector.shape_cast %387 : vector<12x12xf32> to vector<1x1x12x12xf32>
    tpu.vector_store %arg4[%c3_255, %c1_256, %c0_257, %c0_258], %390 {strides = array<i32>} : memref<4x3x12x12xf32, #tpu.memory_space<vmem>>, vector<1x1x12x12xf32>,
    %c3_259 = arith.constant 3 : index
    %c2_260 = arith.constant 2 : index
    %c0_261 = arith.constant 0 : index
    %c0_262 = arith.constant 0 : index
    %391 = vector.load %arg3[%c3_259, %c2_260, %c0_261, %c0_262] : memref<4x3x16x16xf32, #tpu.memory_space<vmem>>, vector<1x1x16x16xf32>
    %392 = vector.shape_cast %391 : vector<1x1x16x16xf32> to vector<16x16xf32>
    %393 = vector.extract_strided_slice %392 {offsets = [0, 0], sizes = [1, 16], strides = [1, 1]} : vector<16x16xf32> to vector<1x16xf32>
    %394 = vector.shape_cast %393 : vector<1x16xf32> to vector<1x16xf32>
    %395 = vector.broadcast %394 : vector<1x16xf32> to vector<8x16xf32>
    %c2_263 = arith.constant 2 : index
    %c0_264 = arith.constant 0 : index
    %c0_265 = arith.constant 0 : index
    %396 = vector.load %arg5[%c2_263, %c0_264, %c0_265] : memref<3x26x16xf32, #tpu.memory_space<vmem>>, vector<1x8x16xf32>
    %397 = vector.shape_cast %396 : vector<1x8x16xf32> to vector<8x16xf32>
    %398 = vector.shape_cast %395 : vector<8x16xf32> to vector<1x8x16xf32>
    tpu.vector_store %arg5[%c2_263, %c0_264, %c0_265], %398 {strides = array<i32>} : memref<3x26x16xf32, #tpu.memory_space<vmem>>, vector<1x8x16xf32>,
    %c2_266 = arith.constant 2 : index
    %c8_267 = arith.constant 8 : index
    %c0_268 = arith.constant 0 : index
    %399 = vector.load %arg5[%c2_266, %c8_267, %c0_268] : memref<3x26x16xf32, #tpu.memory_space<vmem>>, vector<1x16x16xf32>
    %400 = vector.shape_cast %399 : vector<1x16x16xf32> to vector<16x16xf32>
    %401 = vector.shape_cast %392 : vector<16x16xf32> to vector<1x16x16xf32>
    tpu.vector_store %arg5[%c2_266, %c8_267, %c0_268], %401 {strides = array<i32>} : memref<3x26x16xf32, #tpu.memory_space<vmem>>, vector<1x16x16xf32>,
    %402 = vector.extract_strided_slice %392 {offsets = [15, 0], sizes = [1, 16], strides = [1, 1]} : vector<16x16xf32> to vector<1x16xf32>
    %403 = vector.shape_cast %402 : vector<1x16xf32> to vector<1x16xf32>
    %404 = vector.broadcast %403 : vector<1x16xf32> to vector<2x16xf32>
    %c2_269 = arith.constant 2 : index
    %c24_270 = arith.constant 24 : index
    %c0_271 = arith.constant 0 : index
    %405 = vector.load %arg5[%c2_269, %c24_270, %c0_271] : memref<3x26x16xf32, #tpu.memory_space<vmem>>, vector<1x2x16xf32>
    %406 = vector.shape_cast %405 : vector<1x2x16xf32> to vector<2x16xf32>
    %407 = vector.shape_cast %404 : vector<2x16xf32> to vector<1x2x16xf32>
    tpu.vector_store %arg5[%c2_269, %c24_270, %c0_271], %407 {strides = array<i32>} : memref<3x26x16xf32, #tpu.memory_space<vmem>>, vector<1x2x16xf32>,
    %c6_i32_272 = arith.constant 6 : i32
    %408 = arith.addi %318, %c6_i32_272 : i32
    %c2_273 = arith.constant 2 : index
    %409 = arith.index_cast %408 : i32 to index
    %c0_274 = arith.constant 0 : index
    %410 = vector.load %arg5[%c2_273, %409, %c0_274] : memref<3x26x16xf32, #tpu.memory_space<vmem>>, vector<1x12x16xf32>
    %411 = vector.shape_cast %410 : vector<1x12x16xf32> to vector<12x16xf32>
    %cst_275 = arith.constant dense<0.000000e+00> : vector<12x12xf32>
    %412 = tpu.matmul %411, %332, %cst_275 {dimension_numbers = #tpu.dot_dimension_numbers<[1], [0], [0], [1], [0, 0, 1, 1], [], []>} : vector<12x16xf32>, vector<16x12xf32>, vector<12x12xf32> -> vector<12x12xf32>
    %cst_276 = arith.constant 4.44444466 : f32
    %413 = vector.broadcast %cst_276 : f32 to vector<12x12xf32>
    %414 = arith.mulf %412, %413 : vector<12x12xf32>
    %cst_277 = arith.constant -1.80444443 : f32
    %415 = vector.broadcast %cst_277 : f32 to vector<12x12xf32>
    %416 = arith.addf %414, %415 : vector<12x12xf32>
    %c3_278 = arith.constant 3 : index
    %c2_279 = arith.constant 2 : index
    %c0_280 = arith.constant 0 : index
    %c0_281 = arith.constant 0 : index
    %417 = vector.load %arg4[%c3_278, %c2_279, %c0_280, %c0_281] : memref<4x3x12x12xf32, #tpu.memory_space<vmem>>, vector<1x1x12x12xf32>
    %418 = vector.shape_cast %417 : vector<1x1x12x12xf32> to vector<12x12xf32>
    %419 = vector.shape_cast %416 : vector<12x12xf32> to vector<1x1x12x12xf32>
    tpu.vector_store %arg4[%c3_278, %c2_279, %c0_280, %c0_281], %419 {strides = array<i32>} : memref<4x3x12x12xf32, #tpu.memory_space<vmem>>, vector<1x1x12x12xf32>,
    return
  }
  func.func @transform_0(%arg0: i32) -> i32 {
    %c0_i32 = arith.constant 0 : i32
    %c0_i32_0 = arith.constant 0 : i32
    return %c0_i32 : i32
  }
  func.func @transform_1(%arg0: i32) -> i32 {
    %c0_i32 = arith.constant 0 : i32
    %c0_i32_0 = arith.constant 0 : i32
    return %c0_i32 : i32
  }
  func.func @transform_2(%arg0: i32) -> (i32, i32, i32, i32) {
    %c0_i32 = arith.constant 0 : i32
    %c0_i32_0 = arith.constant 0 : i32
    %c0_i32_1 = arith.constant 0 : i32
    %c0_i32_2 = arith.constant 0 : i32
    return %arg0, %c0_i32, %c0_i32_0, %c0_i32_1 : i32, i32, i32, i32
  }
  func.func @transform_3(%arg0: i32) -> (i32, i32, i32, i32) {
    %c0_i32 = arith.constant 0 : i32
    %c0_i32_0 = arith.constant 0 : i32
    %c0_i32_1 = arith.constant 0 : i32
    %c0_i32_2 = arith.constant 0 : i32
    return %arg0, %c0_i32, %c0_i32_0, %c0_i32_1 : i32, i32, i32, i32
  }
}

</mosaic_0001>

<bundles_post_ra>
// kernel: tpu_custom_call.1
= control target key start
LH: loop header
LB: loop body
LE: loop exit
PB: predicated region body
PF: predicated region fallthrough
CT: control target
= control target key end

     0   :  { %8 = vsyncpa [#allocation5], 0  ;;  %s2187_s0 = inlined_call_operand.hbm [shape: s32[4], index: 0, kind: input, shape index: {}]   ;;  %s2188_s1 = inlined_call_operand.vmem [shape: s32[4], index: 1, kind: input, shape index: {}]   ;;  %s2189_s2 = inlined_call_operand.hbm [shape: f32[4,3,16,16], index: 2, kind: input, shape index: {}]   ;;  %s2190_s3 = inlined_call_operand.vmem [shape: f32[4,3,12,12], index: 3, kind: output, shape index: {}]  }
   0x1   :  { %9 = vsyncpa [#allocation6], 0  ;;  %s25_s14 = sshll.u32 %s2188_s1, 4  ;;  %s26_s14 = int_to_ptr.vmem [resolvable:$true] %s25_s14 }
   0x2   :  { %10 = vsyncpa [#allocation4], 0  ;;  %s1735_s15 = smov [#allocation3]   ;;  %s1697_s18 = scalar_lea.vmem %s26_s14, 16 }
   0x3   :  { %18 = dma.hbm_to_smem %s2187_s0, 16, %s1735_s15, [#allocation5]  }
   0x4   :  { %p1698_p0 = scmp.ne.s32.totalorder %s26_s14, %s1697_s18  ;;  %p1702_p1 = scmp.lt.s32.totalorder %s26_s14, %s26_s14 }
   0x5   :  { %p1703_p2 = scmp.lt.s32.totalorder %s1697_s18, %s1697_s18 }
   0x7   :  { %p1704_p3 = por %p1703_p2, %p1702_p1 }
   0x9   :  { %p1705_p4 = pnand %p1704_p3, %p1698_p0 }
   0xb   :  { %1708 = shalt.err (!%p1705_p4)
}
   0xc   :  { %s1736_s19 = smov [#allocation7]   ;;  %s1737_s20 = smov [#allocation8]  }
   0xd   :  { %28 = dma.vmem_to_smem %s26_s14, 16, %s1736_s19, [#allocation6]  }
   0xe   :  { %s34_s21 = sshll.u32 %s1737_s20, 4  ;;  %s35_s21 = int_to_ptr.vmem [resolvable:$true] %s34_s21 }
   0xf   :  { %s1717_s1 = scalar_lea.vmem %s35_s21, 3072  ;;  %p1722_p6 = scmp.lt.s32.totalorder %s35_s21, %s35_s21 }
  0x10   :  { %p1718_p5 = scmp.ne.s32.totalorder %s35_s21, %s1717_s1  ;;  %p1723_p7 = scmp.lt.s32.totalorder %s1717_s1, %s1717_s1 }
  0x12   :  { %p1724_p8 = por %p1723_p7, %p1722_p6 }
  0x14   :  { %p1725_p9 = pnand %p1724_p8, %p1718_p5 }
  0x16   :  { %1728 = shalt.err (!%p1725_p9)
}
  0x17   :  { %s1738_s0 = smov 128   ;;  %s1739_s22 = smov 8  }
  0x18   :  { %40 = dma.hbm_to_vmem [thread:$0]  %s2189_s2, 3072, %s35_s21, [#allocation4], %s1738_s0, %s1738_s0, %s1739_s22  }
  0x19   :  { %1729 = dma.done.wait [#allocation5], 16  }
  0x1a   :  { %1730 = vsyncadd [#allocation5], 4294967280 }
  0x1b   :  { %1731 = dma.done.wait [#allocation6], 16  }
  0x1c   :  { %1732 = vsyncadd [#allocation6], 4294967280 }
  0x1d   :  { %1733 = dma.done.wait [#allocation4], 3072  }
  0x1e   :  { %1734 = vsyncadd [#allocation4], 4294964224 }
  0x1f   :  { %50 = sfence }
  0x20   :  { %v54_v0 = vlaneseq  ;;  %v72_v1 = vld [vmem:[#allocation8] sm:$0xff]  ;;  %v73_v2 = vld [vmem:[#allocation8 + $0x8] sm:$0xff]  ;;  %vm78_vm0 = vcmask 130048   ;;  %s53_s25 = sld [smem:[#allocation7]]  ;;  %vm86_vm1 = vcmask 123904   ;;  %v182_v11 = vld [vmem:[#allocation8 + $0x10] sm:$0xff] }
  0x21   :  { %80 = vst.msk [vmem:[#allocation2 + $0x8] sm:$0xff] %vm78_vm0, %v72_v1  ;;  %81 = vst.msk [vmem:[#allocation2 + $0x10] sm:$0xff] %vm78_vm0, %v73_v2  ;;  %s1465_s26 = sld [smem:[#allocation7 + $0x1]]  ;;  %v183_v12 = vld [vmem:[#allocation8 + $0x18] sm:$0xff]  ;;  %v1740_v25 = vmov 1.0   ;;  %v290_v26 = vld [vmem:[#allocation8 + $0x20] sm:$0xff] }
  0x22   :  { %v1772_v3 = vshrl.u32 %v54_v0, 7  ;;  %s52_s2 = sld [smem:[#allocation3]]  ;;  %v1780_v6 = vand.u32 127, %v54_v0  ;;  %v291_v27 = vld [vmem:[#allocation8 + $0x28] sm:$0xff]  ;;  %v414_v37 = vld [vmem:[#allocation8 + $0x30] sm:$0xff]  ;;  %v415_v38 = vld [vmem:[#allocation8 + $0x38] sm:$0xff] }
  0x23   :  { %s1494_s27 = sld [smem:[#allocation7 + $0x2]]  ;;  %v521_v45 = vld [vmem:[#allocation8 + $0x40] sm:$0xff]  ;;  %v522_v46 = vld [vmem:[#allocation8 + $0x48] sm:$0xff]  ;;  %v628_v53 = vld [vmem:[#allocation8 + $0x50] sm:$0xff] }
  0x24   :  { %v1775_v4 = vsub.s32 0, %v1772_v3  ;;  %v1778_v5 = vsub.s32 7, %v1772_v3  ;;  %v1788_v13 = vadd.s32 8, %v1772_v3  ;;  %s1464_s5 = sld [smem:[#allocation3 + $0x1]]  ;;  %v629_v54 = vld [vmem:[#allocation8 + $0x58] sm:$0xff]  ;;  %v751_v61 = vld [vmem:[#allocation8 + $0x60] sm:$0xff] }
  0x25   :  { %s1523_s6 = sld [smem:[#allocation7 + $0x3]]  ;;  %v752_v62 = vld [vmem:[#allocation8 + $0x68] sm:$0xff]  ;;  %v1089_v23 = vld [vmem:[#allocation8 + $0x98] sm:$0xff] }
  0x26   :  { %v77_v7 = vrot.slane %v72_v1, %v1775_v4  ;;  %v85_v8 = vrot.slane %v73_v2, %v1778_v5  ;;  %s1439_s28 = sadd.s32 4294967294, %s53_s25  ;;  %v187_v15 = vrot.slane %v182_v11, %v1775_v4  ;;  %v195_v16 = vrot.slane %v183_v12, %v1778_v5  ;;  %s1493_s9 = sld [smem:[#allocation3 + $0x2]] }
  0x27   :  { %v60_v9 = vstv %s1439_s28  ;;  %s1466_s29 = sadd.s32 4294967294, %s1465_s26  ;;  %v295_v31 = vrot.slane %v290_v26, %v1775_v4  ;;  %v303_v32 = vrot.slane %v291_v27, %v1778_v5  ;;  %v419_v40 = vrot.slane %v414_v37, %v1775_v4  ;;  %s1522_s11 = sld [smem:[#allocation3 + $0x3]] }
  0x28   :  { %79 = vst.msk [vmem:[#allocation2] sm:$0xff] %vm78_vm0, %v77_v7  ;;  %v61_v10 = vadd.s32 %v60_v9, %v1780_v6  ;;  %v401_v17 = vstv %s1466_s29  ;;  %s1798_s4 = scalar_lea.vmem [#allocation2], %s52_s2  ;;  %v426_v41 = vrot.slane %v415_v38, %v1778_v5  ;;  %v526_v48 = vrot.slane %v521_v45, %v1775_v4  ;;  %v859_v9 = vld [vmem:[#allocation8 + $0x78] sm:$0xff] }
  0x29   :  { %87 = vst.msk [vmem:[#allocation2 + $0x18] sm:$0x3] %vm86_vm1, %v85_v8  ;;  %s1495_s30 = sadd.s32 4294967294, %s1494_s27  ;;  %v402_v19 = vadd.s32 %v401_v17, %v1780_v6  ;;  %v533_v49 = vrot.slane %v522_v46, %v1778_v5  ;;  %v633_v56 = vrot.slane %v628_v53, %v1775_v4  ;;  %v640_v57 = vrot.slane %v629_v54, %v1778_v5  ;;  %v858_v8 = vld [vmem:[#allocation8 + $0x70] sm:$0xff] }
  0x2a   :  { %vm62_vm2 = vcmp.gt.s32.totalorder %v61_v10, 0  ;;  %v738_v24 = vstv %s1495_s30  ;;  %s1917_s8 = scalar_lea.vmem [#allocation2], %s1464_s5  ;;  %v756_v0 = vrot.slane %v751_v61, %v1775_v4  ;;  %v763_v1 = vrot.slane %v752_v62, %v1778_v5 }
  0x2b   :  { %v63_v14 = vsel %vm62_vm2, %v61_v10, 0  ;;  %vm403_vm6 = vcmp.gt.s32.totalorder %v402_v19, 0  ;;  %v739_v29 = vadd.s32 %v738_v24, %v1780_v6  ;;  %s1524_s7 = sadd.s32 4294967294, %s1523_s6 }
  0x2c   :  { %vm64_vm3 = vcmp.lt.s32.totalorder %v63_v14, 15  ;;  %v404_v28 = vsel %vm403_vm6, %v402_v19, 0  ;;  %v1075_v52 = vstv %s1524_s7  ;;  %s1996_s10 = scalar_lea.vmem [#allocation2], %s1493_s9 }
  0x2d   :  { %v65_v18 = vsel %vm64_vm3, %v63_v14, 15  ;;  %vm405_vm7 = vcmp.lt.s32.totalorder %v404_v28, 15  ;;  %vm740_vm9 = vcmp.gt.s32.totalorder %v739_v29, 0  ;;  %v1076_v55 = vadd.s32 %v1075_v52, %v1780_v6  ;;  %s1433_s12 = scalar_lea.vmem [#allocation2], %s1522_s11 }
  0x2e   :  { %vm1794_vm4 = vcmp.eq.s32.totalorder %v1788_v13, %v65_v18  ;;  %vm1803_vm5 = vcmp.eq.s32.totalorder %v1772_v3, %v65_v18  ;;  %v406_v30 = vsel %vm405_vm7, %v404_v28, 15  ;;  %v741_v39 = vsel %vm740_vm9, %v739_v29, 0  ;;  %v1195_v28 = vld [vmem:[#allocation8 + $0xa0] sm:$0xff]  ;;  %v1196_v29 = vld [vmem:[#allocation8 + $0xa8] sm:$0xff] }
  0x2f   :  { %1599 = vmatprep.subr.msk.mxu0 %vm1794_vm4, %v1740_v25  ;;  %1606 = vmatprep.subr.msk.mxu1 %vm1794_vm4, %v1740_v25  ;;  %vm1841_vm8 = vcmp.eq.s32.totalorder %v1788_v13, %v406_v30  ;;  %vm1865_vm10 = vcmp.eq.s32.totalorder %v1772_v3, %v406_v30  ;;  %vm742_vm11 = vcmp.lt.s32.totalorder %v741_v39, 15  ;;  %vm1077_vm13 = vcmp.gt.s32.totalorder %v1076_v55, 0 }
  0x30   :  { %v1442_v21 = vld [vmem:[%s1798_s4 + $0x6] sm:$0xff]  ;;  %v1443_v22 = vld [vmem:[%s1798_s4 + $0xe] sm:$0xf]  ;;  %1600 = vmatpush3.msk.msra.mxu0 %vm1794_vm4, %v1740_v25  ;;  %1607 = vmatpush3.msk.msra.mxu1 %vm1794_vm4, %v1740_v25  ;;  %v743_v44 = vsel %vm742_vm11, %v741_v39, 15  ;;  %v1078_v63 = vsel %vm1077_vm13, %v1076_v55, 0  ;;  %v1200_v30 = vrot.slane %v1195_v28, %v1775_v4 }
  0x31   :  { %189 = vst.msk [vmem:[#allocation2 + $0x20] sm:$0xff] %vm78_vm0, %v187_v15  ;;  %190 = vst.msk [vmem:[#allocation2 + $0x28] sm:$0xff] %vm78_vm0, %v182_v11  ;;  %1601 = vmatprep.subr.msk.mxu0 %vm1803_vm5, %v1740_v25  ;;  %1608 = vmatprep.subr.msk.mxu1 %vm1803_vm5, %v1740_v25  ;;  %vm1902_vm12 = vcmp.eq.s32.totalorder %v1788_v13, %v743_v44  ;;  %vm1950_vm14 = vcmp.eq.s32.totalorder %v1772_v3, %v743_v44  ;;  %vm1079_vm15 = vcmp.lt.s32.totalorder %v1078_v63, 15  ;;  %v965_v15 = vld [vmem:[#allocation8 + $0x80] sm:$0xff] }
  0x32   :  { %191 = vst.msk [vmem:[#allocation2 + $0x30] sm:$0xff] %vm78_vm0, %v183_v12  ;;  %1602 = vmatpush3.msk.msra.mxu0 %vm1803_vm5, %v1740_v25  ;;  %1603 = vmatprep.mubr.msk.f32.mxu0 %vm78_vm0, %v1442_v21  ;;  %v1080_v7 = vsel %vm1079_vm15, %v1078_v63, 15  ;;  %v863_v11 = vrot.slane %v858_v8, %v1775_v4  ;;  %v870_v12 = vrot.slane %v859_v9, %v1778_v5 }
  0x33   :  { %196 = vst.msk [vmem:[#allocation2 + $0x38] sm:$0x3] %vm86_vm1, %v195_v16  ;;  %1609 = vmatpush3.msk.msra.mxu1 %vm1803_vm5, %v1740_v25  ;;  %1604 = vmatmul.mubr.msk.f32.vlgmr.msra.gmra.mxu0 %vm78_vm0, %v1443_v22  ;;  %vm1981_vm2 = vcmp.eq.s32.totalorder %v1788_v13, %v1080_v7  ;;  %v966_v16 = vld [vmem:[#allocation8 + $0x88] sm:$0xff]  ;;  %v970_v17 = vrot.slane %v965_v15, %v1775_v4  ;;  %v1088_v22 = vld [vmem:[#allocation8 + $0x90] sm:$0xff] }
  0x34   :  { %1613 = vmatprep.subr.msk.mxu0 %vm1794_vm4, %v1740_v25  ;;  %1620 = vmatprep.subr.msk.mxu1 %vm1841_vm8, %v1740_v25  ;;  %v977_v18 = vrot.slane %v966_v16, %v1778_v5  ;;  %vm2028_vm3 = vcmp.eq.s32.totalorder %v1772_v3, %v1080_v7  ;;  %v1093_v24 = vrot.slane %v1088_v22, %v1775_v4 }
  0x35   :  { %1614 = vmatpush3.msk.msra.mxu0 %vm1794_vm4, %v1740_v25  ;;  %vm179_vm4 = vcmask 93184  }
  0x36   :  { %1615 = vmatprep.subr.msk.mxu0 %vm1803_vm5, %v1740_v25 }
  0x37   :  { %1616 = vmatpush3.msk.msra.mxu0 %vm1803_vm5, %v1740_v25  ;;  %vm177_vm5 = vcmask 97280  }
  0x38   :  { %1627 = vmatprep.subr.msk.mxu0 %vm1841_vm8, %v1740_v25 }
  0x3a   :  { %v1448_v34 = vld [vmem:[%s1798_s4 + $0x26] sm:$0xff]  ;;  %v1449_v35 = vld [vmem:[%s1798_s4 + $0x2e] sm:$0xf] }
  0x3b   :  { %297 = vst.msk [vmem:[#allocation2 + $0x40] sm:$0xff] %vm78_vm0, %v295_v31  ;;  %298 = vst.msk [vmem:[#allocation2 + $0x48] sm:$0xff] %vm78_vm0, %v290_v26  ;;  %1610 = vmatprep.mubr.msk.f32.mxu1 %vm78_vm0, %v1448_v34  ;;  %v1100_v26 = vrot.slane %v1089_v23, %v1778_v5  ;;  %v1207_v31 = vrot.slane %v1196_v29, %v1778_v5  ;;  %v1302_v34 = vld [vmem:[#allocation8 + $0xb0] sm:$0xff] }
  0x3c   :  { %299 = vst.msk [vmem:[#allocation2 + $0x50] sm:$0xff] %vm78_vm0, %v291_v27  ;;  %1611 = vmatmul.mubr.msk.f32.vlgmr.msra.gmra.mxu1 %vm78_vm0, %v1449_v35  ;;  %v1303_v35 = vld [vmem:[#allocation8 + $0xb8] sm:$0xff]  ;;  %v1307_v36 = vrot.slane %v1302_v34, %v1775_v4 }
  0x3d   :  { %304 = vst.msk [vmem:[#allocation2 + $0x58] sm:$0x3] %vm86_vm1, %v303_v32  ;;  %1621 = vmatpush3.msk.msra.mxu1 %vm1841_vm8, %v1740_v25 }
  0x3e   :  { %1622 = vmatprep.subr.msk.mxu1 %vm1865_vm10, %v1740_v25 }
  0x3f   :  { %1623 = vmatpush3.msk.msra.mxu1 %vm1865_vm10, %v1740_v25 }
  0x40   :  { %1634 = vmatprep.subr.msk.mxu1 %vm1841_vm8, %v1740_v25 }
  0x44   :  { %v1456_v42 = vld [vmem:[%s1798_s4 + $0x46] sm:$0xff]  ;;  %v1457_v43 = vld [vmem:[%s1798_s4 + $0x4e] sm:$0xf] }
  0x45   :  { %420 = vst.msk [vmem:[#allocation2] sm:$0xff] %vm78_vm0, %v419_v40  ;;  %421 = vst.msk [vmem:[#allocation2 + $0x8] sm:$0xff] %vm78_vm0, %v414_v37  ;;  %1617 = vmatprep.mubr.msk.f32.mxu0 %vm78_vm0, %v1456_v42  ;;  %v1314_v37 = vrot.slane %v1303_v35, %v1778_v5 }
  0x46   :  { %422 = vst.msk [vmem:[#allocation2 + $0x10] sm:$0xff] %vm78_vm0, %v415_v38  ;;  %1618 = vmatmul.mubr.msk.f32.vlgmr.msra.gmra.mxu0 %vm78_vm0, %v1457_v43 }
  0x47   :  { %427 = vst.msk [vmem:[#allocation2 + $0x18] sm:$0x3] %vm86_vm1, %v426_v41  ;;  %1628 = vmatpush3.msk.msra.mxu0 %vm1841_vm8, %v1740_v25 }
  0x48   :  { %1629 = vmatprep.subr.msk.mxu0 %vm1865_vm10, %v1740_v25 }
  0x49   :  { %1630 = vmatpush3.msk.msra.mxu0 %vm1865_vm10, %v1740_v25 }
  0x4a   :  { %1641 = vmatprep.subr.msk.mxu0 %vm1902_vm12, %v1740_v25 }
  0x4e   :  { %v1469_v50 = vld [vmem:[%s1917_s8 + $0x6] sm:$0xff]  ;;  %v1470_v51 = vld [vmem:[%s1917_s8 + $0xe] sm:$0xf] }
  0x4f   :  { %527 = vst.msk [vmem:[#allocation2 + $0x20] sm:$0xff] %vm78_vm0, %v526_v48  ;;  %528 = vst.msk [vmem:[#allocation2 + $0x28] sm:$0xff] %vm78_vm0, %v521_v45  ;;  %1624 = vmatprep.mubr.msk.f32.mxu1 %vm78_vm0, %v1469_v50 }
  0x50   :  { %529 = vst.msk [vmem:[#allocation2 + $0x30] sm:$0xff] %vm78_vm0, %v522_v46  ;;  %1625 = vmatmul.mubr.msk.f32.vlgmr.msra.gmra.mxu1 %vm78_vm0, %v1470_v51 }
  0x51   :  { %534 = vst.msk [vmem:[#allocation2 + $0x38] sm:$0x3] %vm86_vm1, %v533_v49  ;;  %1635 = vmatpush3.msk.msra.mxu1 %vm1841_vm8, %v1740_v25 }
  0x52   :  { %1636 = vmatprep.subr.msk.mxu1 %vm1865_vm10, %v1740_v25 }
  0x53   :  { %1637 = vmatpush3.msk.msra.mxu1 %vm1865_vm10, %v1740_v25 }
  0x54   :  { %1648 = vmatprep.subr.msk.mxu1 %vm1902_vm12, %v1740_v25 }
  0x58   :  { %v1477_v58 = vld [vmem:[%s1917_s8 + $0x26] sm:$0xff]  ;;  %v1478_v59 = vld [vmem:[%s1917_s8 + $0x2e] sm:$0xf] }
  0x59   :  { %634 = vst.msk [vmem:[#allocation2 + $0x40] sm:$0xff] %vm78_vm0, %v633_v56  ;;  %635 = vst.msk [vmem:[#allocation2 + $0x48] sm:$0xff] %vm78_vm0, %v628_v53  ;;  %1631 = vmatprep.mubr.msk.f32.mxu0 %vm78_vm0, %v1477_v58 }
  0x5a   :  { %636 = vst.msk [vmem:[#allocation2 + $0x50] sm:$0xff] %vm78_vm0, %v629_v54  ;;  %1632 = vmatmul.mubr.msk.f32.vlgmr.msra.gmra.mxu0 %vm78_vm0, %v1478_v59 }
  0x5b   :  { %641 = vst.msk [vmem:[#allocation2 + $0x58] sm:$0x3] %vm86_vm1, %v640_v57  ;;  %1642 = vmatpush3.msk.msra.mxu0 %vm1902_vm12, %v1740_v25 }
  0x5c   :  { %1643 = vmatprep.subr.msk.mxu0 %vm1950_vm14, %v1740_v25 }
  0x5d   :  { %1644 = vmatpush3.msk.msra.mxu0 %vm1950_vm14, %v1740_v25 }
  0x5e   :  { %1655 = vmatprep.subr.msk.mxu0 %vm1902_vm12, %v1740_v25 }
  0x62   :  { %v1485_v2 = vld [vmem:[%s1917_s8 + $0x46] sm:$0xff]  ;;  %v1486_v6 = vld [vmem:[%s1917_s8 + $0x4e] sm:$0xf] }
  0x63   :  { %1638 = vmatprep.mubr.msk.f32.mxu1 %vm78_vm0, %v1485_v2  ;;  %757 = vst.msk [vmem:[#allocation2] sm:$0xff] %vm78_vm0, %v756_v0  ;;  %758 = vst.msk [vmem:[#allocation2 + $0x8] sm:$0xff] %vm78_vm0, %v751_v61 }
  0x64   :  { %759 = vst.msk [vmem:[#allocation2 + $0x10] sm:$0xff] %vm78_vm0, %v752_v62  ;;  %1639 = vmatmul.mubr.msk.f32.vlgmr.msra.gmra.mxu1 %vm78_vm0, %v1486_v6 }
  0x65   :  { %764 = vst.msk [vmem:[#allocation2 + $0x18] sm:$0x3] %vm86_vm1, %v763_v1  ;;  %1649 = vmatpush3.msk.msra.mxu1 %vm1902_vm12, %v1740_v25 }
  0x66   :  { %1650 = vmatprep.subr.msk.mxu1 %vm1950_vm14, %v1740_v25 }
  0x67   :  { %1651 = vmatpush3.msk.msra.mxu1 %vm1950_vm14, %v1740_v25 }
  0x68   :  { %1662 = vmatprep.subr.msk.mxu1 %vm1981_vm2, %v1740_v25 }
  0x6c   :  { %v1498_v13 = vld [vmem:[%s1996_s10 + $0x6] sm:$0xff]  ;;  %v1499_v14 = vld [vmem:[%s1996_s10 + $0xe] sm:$0xf] }
  0x6d   :  { %1645 = vmatprep.mubr.msk.f32.mxu0 %vm78_vm0, %v1498_v13  ;;  %864 = vst.msk [vmem:[#allocation2 + $0x20] sm:$0xff] %vm78_vm0, %v863_v11  ;;  %865 = vst.msk [vmem:[#allocation2 + $0x28] sm:$0xff] %vm78_vm0, %v858_v8 }
  0x6e   :  { %866 = vst.msk [vmem:[#allocation2 + $0x30] sm:$0xff] %vm78_vm0, %v859_v9  ;;  %1646 = vmatmul.mubr.msk.f32.vlgmr.msra.gmra.mxu0 %vm78_vm0, %v1499_v14 }
  0x6f   :  { %871 = vst.msk [vmem:[#allocation2 + $0x38] sm:$0x3] %vm86_vm1, %v870_v12  ;;  %1656 = vmatpush3.msk.msra.mxu0 %vm1902_vm12, %v1740_v25 }
  0x70   :  { %1657 = vmatprep.subr.msk.mxu0 %vm1950_vm14, %v1740_v25 }
  0x71   :  { %1658 = vmatpush3.msk.msra.mxu0 %vm1950_vm14, %v1740_v25 }
  0x72   :  { %1669 = vmatprep.subr.msk.mxu0 %vm1981_vm2, %v1740_v25 }
  0x76   :  { %v1506_v19 = vld [vmem:[%s1996_s10 + $0x26] sm:$0xff]  ;;  %v1507_v20 = vld [vmem:[%s1996_s10 + $0x2e] sm:$0xf] }
  0x77   :  { %1652 = vmatprep.mubr.msk.f32.mxu1 %vm78_vm0, %v1506_v19  ;;  %971 = vst.msk [vmem:[#allocation2 + $0x40] sm:$0xff] %vm78_vm0, %v970_v17  ;;  %972 = vst.msk [vmem:[#allocation2 + $0x48] sm:$0xff] %vm78_vm0, %v965_v15 }
  0x78   :  { %973 = vst.msk [vmem:[#allocation2 + $0x50] sm:$0xff] %vm78_vm0, %v966_v16  ;;  %1653 = vmatmul.mubr.msk.f32.vlgmr.msra.gmra.mxu1 %vm78_vm0, %v1507_v20 }
  0x79   :  { %978 = vst.msk [vmem:[#allocation2 + $0x58] sm:$0x3] %vm86_vm1, %v977_v18  ;;  %1663 = vmatpush3.msk.msra.mxu1 %vm1981_vm2, %v1740_v25 }
  0x7a   :  { %1664 = vmatprep.subr.msk.mxu1 %vm2028_vm3, %v1740_v25 }
  0x7b   :  { %1665 = vmatpush3.msk.msra.mxu1 %vm2028_vm3, %v1740_v25 }
  0x7c   :  { %1676 = vmatprep.subr.msk.mxu1 %vm1981_vm2, %v1740_v25 }
  0x80   :  { %v1514_v3 = vld [vmem:[%s1996_s10 + $0x46] sm:$0xff]  ;;  %v1515_v27 = vld [vmem:[%s1996_s10 + $0x4e] sm:$0xf] }
  0x81   :  { %1659 = vmatprep.mubr.msk.f32.mxu0 %vm78_vm0, %v1514_v3  ;;  %1094 = vst.msk [vmem:[#allocation2] sm:$0xff] %vm78_vm0, %v1093_v24  ;;  %1095 = vst.msk [vmem:[#allocation2 + $0x8] sm:$0xff] %vm78_vm0, %v1088_v22 }
  0x82   :  { %1096 = vst.msk [vmem:[#allocation2 + $0x10] sm:$0xff] %vm78_vm0, %v1089_v23  ;;  %1660 = vmatmul.mubr.msk.f32.vlgmr.msra.gmra.mxu0 %vm78_vm0, %v1515_v27 }
  0x83   :  { %1101 = vst.msk [vmem:[#allocation2 + $0x18] sm:$0x3] %vm86_vm1, %v1100_v26  ;;  %1670 = vmatpush3.msk.msra.mxu0 %vm1981_vm2, %v1740_v25 }
  0x84   :  { %1671 = vmatprep.subr.msk.mxu0 %vm2028_vm3, %v1740_v25 }
  0x85   :  { %1672 = vmatpush3.msk.msra.mxu0 %vm2028_vm3, %v1740_v25 }
  0x8a   :  { %v1527_v32 = vld [vmem:[%s1433_s12 + $0x6] sm:$0xff]  ;;  %v1528_v33 = vld [vmem:[%s1433_s12 + $0xe] sm:$0xf] }
  0x8b   :  { %1666 = vmatprep.mubr.msk.f32.mxu1 %vm78_vm0, %v1527_v32  ;;  %1201 = vst.msk [vmem:[#allocation2 + $0x20] sm:$0xff] %vm78_vm0, %v1200_v30  ;;  %1202 = vst.msk [vmem:[#allocation2 + $0x28] sm:$0xff] %vm78_vm0, %v1195_v28 }
  0x8c   :  { %1203 = vst.msk [vmem:[#allocation2 + $0x30] sm:$0xff] %vm78_vm0, %v1196_v29  ;;  %1667 = vmatmul.mubr.msk.f32.vlgmr.msra.gmra.mxu1 %vm78_vm0, %v1528_v33 }
  0x8d   :  { %1208 = vst.msk [vmem:[#allocation2 + $0x38] sm:$0x3] %vm86_vm1, %v1207_v31  ;;  %1677 = vmatpush3.msk.msra.mxu1 %vm1981_vm2, %v1740_v25 }
  0x8e   :  { %1678 = vmatprep.subr.msk.mxu1 %vm2028_vm3, %v1740_v25 }
  0x8f   :  { %1679 = vmatpush3.msk.msra.mxu1 %vm2028_vm3, %v1740_v25 }
  0x94   :  { %v1535_v38 = vld [vmem:[%s1433_s12 + $0x26] sm:$0xff]  ;;  %v1536_v39 = vld [vmem:[%s1433_s12 + $0x2e] sm:$0xf] }
  0x95   :  { %1673 = vmatprep.mubr.msk.f32.mxu0 %vm78_vm0, %v1535_v38  ;;  %1308 = vst.msk [vmem:[#allocation2 + $0x40] sm:$0xff] %vm78_vm0, %v1307_v36  ;;  %1309 = vst.msk [vmem:[#allocation2 + $0x48] sm:$0xff] %vm78_vm0, %v1302_v34 }
  0x96   :  { %1310 = vst.msk [vmem:[#allocation2 + $0x50] sm:$0xff] %vm78_vm0, %v1303_v35  ;;  %1674 = vmatmul.mubr.msk.f32.vlgmr.msra.gmra.mxu0 %vm78_vm0, %v1536_v39 }
  0x97   :  { %1315 = vst.msk [vmem:[#allocation2 + $0x58] sm:$0x3] %vm86_vm1, %v1314_v37 }
  0x9e   :  { %v1543_v4 = vld [vmem:[%s1433_s12 + $0x46] sm:$0xff]  ;;  %v1544_v5 = vld [vmem:[%s1433_s12 + $0x4e] sm:$0xf] }
  0x9f   :  { %1680 = vmatprep.mubr.msk.f32.mxu1 %vm78_vm0, %v1543_v4 }
  0xa0   :  { %1681 = vmatmul.mubr.msk.f32.vlgmr.msra.gmra.mxu1 %vm78_vm0, %v1544_v5 }
  0xf3   :  { %v1605_v25 = vpop.f32.mrf.mxu0 }
  0xf4   :  { %v174_v40 = vmul.f32 4.366812, %v1605_v25 }
  0xf5   :  { %v164_v41 = vpop.f32.mrf.mxu0 }
  0xf6   :  { %v176_v42 = vadd.f32 -2.117904, %v174_v40  ;;  %v173_v43 = vmul.f32 4.366812, %v164_v41 }
  0xf8   :  { %180 = vst.msk [vmem:[%s2190_s3 + $0x8] sm:$0xf] %vm179_vm4, %v176_v42  ;;  %v175_v45 = vadd.f32 -2.117904, %v173_v43 }
  0xfa   :  { %178 = vst.msk [vmem:[%s2190_s3] sm:$0xff] %vm177_vm5, %v175_v45 }
  0xfc   :  { %v1612_v44 = vpop.f32.mrf.mxu1 }
  0xfd   :  { %v283_v46 = vmul.f32 4.464286, %v1612_v44 }
  0xfe   :  { %v273_v47 = vpop.f32.mrf.mxu1 }
  0xff   :  { %v285_v48 = vadd.f32 -2.0357144, %v283_v46  ;;  %v282_v49 = vmul.f32 4.464286, %v273_v47 }
 0x101   :  { %1455 = vst.msk [vmem:[%s2190_s3 + $0x18] sm:$0xf] %vm179_vm4, %v285_v48  ;;  %v284_v50 = vadd.f32 -2.0357144, %v282_v49 }
 0x103   :  { %1454 = vst.msk [vmem:[%s2190_s3 + $0x10] sm:$0xff] %vm177_vm5, %v284_v50 }
 0x106   :  { %v1619_v51 = vpop.f32.mrf.mxu0 }
 0x107   :  { %v391_v52 = vmul.f32 4.4444447, %v1619_v51 }
 0x108   :  { %v381_v53 = vpop.f32.mrf.mxu0 }
 0x109   :  { %v393_v54 = vadd.f32 -1.8044444, %v391_v52  ;;  %v390_v55 = vmul.f32 4.4444447, %v381_v53 }
 0x10b   :  { %1463 = vst.msk [vmem:[%s2190_s3 + $0x28] sm:$0xf] %vm179_vm4, %v393_v54  ;;  %v392_v56 = vadd.f32 -1.8044444, %v390_v55 }
 0x10d   :  { %1462 = vst.msk [vmem:[%s2190_s3 + $0x20] sm:$0xff] %vm177_vm5, %v392_v56 }
 0x110   :  { %v1626_v57 = vpop.f32.mrf.mxu1 }
 0x111   :  { %v514_v58 = vmul.f32 4.366812, %v1626_v57 }
 0x112   :  { %v504_v59 = vpop.f32.mrf.mxu1 }
 0x113   :  { %v516_v60 = vadd.f32 -2.117904, %v514_v58  ;;  %v513_v61 = vmul.f32 4.366812, %v504_v59 }
 0x115   :  { %1476 = vst.msk [vmem:[%s2190_s3 + $0x38] sm:$0xf] %vm179_vm4, %v516_v60  ;;  %v515_v62 = vadd.f32 -2.117904, %v513_v61 }
 0x117   :  { %1475 = vst.msk [vmem:[%s2190_s3 + $0x30] sm:$0xff] %vm177_vm5, %v515_v62 }
 0x11a   :  { %v1633_v63 = vpop.f32.mrf.mxu0 }
 0x11b   :  { %v621_v0 = vmul.f32 4.464286, %v1633_v63 }
 0x11c   :  { %v611_v1 = vpop.f32.mrf.mxu0 }
 0x11d   :  { %v623_v2 = vadd.f32 -2.0357144, %v621_v0  ;;  %v620_v6 = vmul.f32 4.464286, %v611_v1 }
 0x11f   :  { %1484 = vst.msk [vmem:[%s2190_s3 + $0x48] sm:$0xf] %vm179_vm4, %v623_v2  ;;  %v622_v7 = vadd.f32 -2.0357144, %v620_v6 }
 0x121   :  { %1483 = vst.msk [vmem:[%s2190_s3 + $0x40] sm:$0xff] %vm177_vm5, %v622_v7 }
 0x124   :  { %v1640_v8 = vpop.f32.mrf.mxu1 }
 0x125   :  { %v728_v9 = vmul.f32 4.4444447, %v1640_v8 }
 0x126   :  { %v718_v10 = vpop.f32.mrf.mxu1 }
 0x127   :  { %v730_v11 = vadd.f32 -1.8044444, %v728_v9  ;;  %v727_v12 = vmul.f32 4.4444447, %v718_v10 }
 0x129   :  { %1492 = vst.msk [vmem:[%s2190_s3 + $0x58] sm:$0xf] %vm179_vm4, %v730_v11  ;;  %v729_v13 = vadd.f32 -1.8044444, %v727_v12 }
 0x12b   :  { %1491 = vst.msk [vmem:[%s2190_s3 + $0x50] sm:$0xff] %vm177_vm5, %v729_v13 }
 0x12e   :  { %v1647_v14 = vpop.f32.mrf.mxu0 }
 0x12f   :  { %v851_v15 = vmul.f32 4.366812, %v1647_v14 }
 0x130   :  { %v841_v16 = vpop.f32.mrf.mxu0 }
 0x131   :  { %v853_v17 = vadd.f32 -2.117904, %v851_v15  ;;  %v850_v18 = vmul.f32 4.366812, %v841_v16 }
 0x133   :  { %1505 = vst.msk [vmem:[%s2190_s3 + $0x68] sm:$0xf] %vm179_vm4, %v853_v17  ;;  %v852_v19 = vadd.f32 -2.117904, %v850_v18 }
 0x135   :  { %1504 = vst.msk [vmem:[%s2190_s3 + $0x60] sm:$0xff] %vm177_vm5, %v852_v19 }
 0x138   :  { %v1654_v20 = vpop.f32.mrf.mxu1 }
 0x139   :  { %v958_v21 = vmul.f32 4.464286, %v1654_v20 }
 0x13a   :  { %v948_v22 = vpop.f32.mrf.mxu1 }
 0x13b   :  { %v960_v23 = vadd.f32 -2.0357144, %v958_v21  ;;  %v957_v24 = vmul.f32 4.464286, %v948_v22 }
 0x13d   :  { %1513 = vst.msk [vmem:[%s2190_s3 + $0x78] sm:$0xf] %vm179_vm4, %v960_v23  ;;  %v959_v26 = vadd.f32 -2.0357144, %v957_v24 }
 0x13f   :  { %1512 = vst.msk [vmem:[%s2190_s3 + $0x70] sm:$0xff] %vm177_vm5, %v959_v26 }
 0x142   :  { %v1661_v3 = vpop.f32.mrf.mxu0 }
 0x143   :  { %v1065_v27 = vmul.f32 4.4444447, %v1661_v3 }
 0x144   :  { %v1055_v28 = vpop.f32.mrf.mxu0 }
 0x145   :  { %v1067_v29 = vadd.f32 -1.8044444, %v1065_v27  ;;  %v1064_v30 = vmul.f32 4.4444447, %v1055_v28 }
 0x147   :  { %1521 = vst.msk [vmem:[%s2190_s3 + $0x88] sm:$0xf] %vm179_vm4, %v1067_v29  ;;  %v1066_v31 = vadd.f32 -1.8044444, %v1064_v30 }
 0x149   :  { %1520 = vst.msk [vmem:[%s2190_s3 + $0x80] sm:$0xff] %vm177_vm5, %v1066_v31 }
 0x14c   :  { %v1668_v32 = vpop.f32.mrf.mxu1 }
 0x14d   :  { %v1188_v33 = vmul.f32 4.366812, %v1668_v32 }
 0x14e   :  { %v1178_v34 = vpop.f32.mrf.mxu1 }
 0x14f   :  { %v1190_v35 = vadd.f32 -2.117904, %v1188_v33  ;;  %v1187_v36 = vmul.f32 4.366812, %v1178_v34 }
 0x151   :  { %1534 = vst.msk [vmem:[%s2190_s3 + $0x98] sm:$0xf] %vm179_vm4, %v1190_v35  ;;  %v1189_v37 = vadd.f32 -2.117904, %v1187_v36 }
 0x153   :  { %1533 = vst.msk [vmem:[%s2190_s3 + $0x90] sm:$0xff] %vm177_vm5, %v1189_v37 }
 0x156   :  { %v1675_v38 = vpop.f32.mrf.mxu0 }
 0x157   :  { %v1295_v39 = vmul.f32 4.464286, %v1675_v38 }
 0x158   :  { %v1285_v4 = vpop.f32.mrf.mxu0 }
 0x159   :  { %v1297_v5 = vadd.f32 -2.0357144, %v1295_v39  ;;  %v1294_v25 = vmul.f32 4.464286, %v1285_v4 }
 0x15b   :  { %1542 = vst.msk [vmem:[%s2190_s3 + $0xa8] sm:$0xf] %vm179_vm4, %v1297_v5  ;;  %v1296_v40 = vadd.f32 -2.0357144, %v1294_v25 }
 0x15d   :  { %1541 = vst.msk [vmem:[%s2190_s3 + $0xa0] sm:$0xff] %vm177_vm5, %v1296_v40 }
 0x160   :  { %v1682_v41 = vpop.f32.mrf.mxu1 }
 0x161   :  { %v1402_v42 = vmul.f32 4.4444447, %v1682_v41 }
 0x162   :  { %v1392_v43 = vpop.f32.mrf.mxu1 }
 0x163   :  { %v1404_v44 = vadd.f32 -1.8044444, %v1402_v42  ;;  %v1401_v45 = vmul.f32 4.4444447, %v1392_v43 }
 0x165   :  { %1550 = vst.msk [vmem:[%s2190_s3 + $0xb8] sm:$0xf] %vm179_vm4, %v1404_v44  ;;  %v1403_v46 = vadd.f32 -1.8044444, %v1401_v45 }
 0x167   :  { %1549 = vst.msk [vmem:[%s2190_s3 + $0xb0] sm:$0xff] %vm177_vm5, %v1403_v46 }
 0x168   :  { %1412 = vsyncpa [#allocation4], 1 }
 0x169   :  { %1413 = vsyncpa [#allocation5], 1 }
 0x16a   :  { %1414 = vsyncpa [#allocation6], 1 }

</bundles_post_ra>
